<compile_context>
chip_gen: v7x
topology: tpu7x:2x2x1
jax: 0.10.0
libtpu: 0.0.40
codegen_flags: <defaults>
</compile_context>

<pallas_src>
import functools

import jax
import jax.numpy as jnp
from jax import lax
from jax.experimental import pallas as pl
from jax.experimental.pallas import tpu as pltpu


def _round_up(x, m):
    return ((x + m - 1) // m) * m


# PyTorch nn.LSTM packs gates as [i, f, g, o]; we repack to [i, f, o, g] so the
# three sigmoid gates are contiguous.
_GATE_ORDER = (0, 1, 3, 2)


# ----------------------------- Pallas kernel ------------------------------- #
def lstm_fc_kernel(pg_ref, whh_ref, wfc_ref, bfc_ref, out_ref):
    """Single grid point; the full recurrence runs in-kernel.

    pg_ref  : (T, B, 4*Hp)  pre-gates x_t @ W_ih^T + b, gate order [i,f,o,g]
    whh_ref : (Hp, 4*Hp)    W_hh^T (repacked), padded rows/cols zero
    wfc_ref : (Hp, Gp)      W_fc^T, zero-padded
    bfc_ref : (1, Gp)       b_fc, zero-padded
    out_ref : (B, Gp)       logits (lane-dense; valid cols are [:G])
    """
    T, B, _ = pg_ref.shape
    Hp = whh_ref.shape[0]

    def step(t, carry):
        h, c = carry
        # Only one MXU push on the serial critical path per step.
        gates = pg_ref[t] + jnp.dot(h, whh_ref[...],
                                    preferred_element_type=jnp.float32)
        # Fused sigmoid over the contiguous [i|f|o] slab: single EUP tanh push
        # via sigmoid(x) = 0.5*(tanh(0.5*x) + 1).
        sig = 0.5 * (jnp.tanh(0.5 * gates[:, :3 * Hp]) + 1.0)
        i_g = sig[:, 0 * Hp:1 * Hp]
        f_g = sig[:, 1 * Hp:2 * Hp]
        o_g = sig[:, 2 * Hp:3 * Hp]
        g_g = jnp.tanh(gates[:, 3 * Hp:4 * Hp])
        c_new = f_g * c + i_g * g_g
        h_new = o_g * jnp.tanh(c_new)
        return h_new, c_new

    h0 = jnp.zeros((B, Hp), jnp.float32)
    c0 = jnp.zeros((B, Hp), jnp.float32)
    # T is tiny here; for long sequences cap unroll (e.g. unroll=8).
    h_last, _ = lax.fori_loop(0, T, step, (h0, c0), unroll=True)

    out_ref[...] = (jnp.dot(h_last, wfc_ref[...],
                            preferred_element_type=jnp.float32)
                    + bfc_ref[...]).astype(out_ref.dtype)


# ------------------------ one-time weight packing --------------------------- #
def prepare_params(params):
    """Pad / transpose / gate-reorder weights ONCE (hoisted out of forward)."""
    f32 = jnp.float32
    emb = jnp.asarray(params["embedding"], f32)    # (num_nodes, E)
    w_ih = jnp.asarray(params["w_ih"], f32)        # (4H, E)
    w_hh = jnp.asarray(params["w_hh"], f32)        # (4H, H)
    b = jnp.asarray(params["b_ih"] + params["b_hh"], f32)   # (4H,)
    w_fc = jnp.asarray(params["w_fc"], f32)        # (G, H)
    b_fc = jnp.asarray(params["b_fc"], f32)        # (G,)

    H = w_hh.shape[1]
    G = w_fc.shape[0]
    Hp = _round_up(H, 128)
    Gp = _round_up(G, 128)

    def pack_gate_cols(w_t):                       # (rows, 4H) -> (rows, 4Hp)
        rows = w_t.shape[0]
        w4 = w_t.reshape(rows, 4, H)[:, _GATE_ORDER, :]
        out = jnp.zeros((rows, 4, Hp), f32).at[:, :, :H].set(w4)
        return out.reshape(rows, 4 * Hp)

    wih_pad = pack_gate_cols(w_ih.T)                                 # (E, 4Hp)
    whh_pad = jnp.zeros((Hp, 4 * Hp), f32).at[:H, :].set(
        pack_gate_cols(w_hh.T))                                      # (Hp, 4Hp)
    b_pad = jnp.zeros((4, Hp), f32).at[:, :H].set(
        b.reshape(4, H)[list(_GATE_ORDER), :]).reshape(4 * Hp)       # (4Hp,)
    wfc_pad = jnp.zeros((Hp, Gp), f32).at[:H, :G].set(w_fc.T)        # (Hp, Gp)
    bfc_pad = jnp.zeros((1, Gp), f32).at[0, :G].set(b_fc)            # (1, Gp)

    packed = {
        "embedding": emb,
        "wih_pad": wih_pad,
        "whh_pad": whh_pad,
        "b_pad": b_pad,
        "wfc_pad": wfc_pad,
        "bfc_pad": bfc_pad,
    }
    return packed, G


# ------------------------------- forward ------------------------------------ #
@functools.partial(jax.jit, static_argnames=("num_goals",))
def simple_lstm_forward(path_idxs, packed, *, num_goals):
    B, T = path_idxs.shape
    E = packed["wih_pad"].shape[0]
    Hp = packed["whh_pad"].shape[0]
    Gp = packed["wfc_pad"].shape[1]
    f32 = jnp.float32

    # Hoisted input projection.  Transpose the small (B,T,E) embedding tensor
    # (E floats/token) rather than the wide (B,T,4Hp) pregate tensor.
    x = packed["embedding"][path_idxs].astype(f32)          # (B, T, E)
    x_t = jnp.transpose(x, (1, 0, 2)).reshape(T * B, E)     # (T*B, E)
    pregates = (x_t @ packed["wih_pad"]
                + packed["b_pad"]).reshape(T, B, 4 * Hp)    # (T, B, 4Hp)

    resident = lambda i: (0, 0)
    grid_spec = pltpu.PrefetchScalarGridSpec(
        num_scalar_prefetch=0,
        grid=(1,),
        in_specs=[
            pl.BlockSpec((T, B, 4 * Hp), lambda i: (0, 0, 0)),
            pl.BlockSpec((Hp, 4 * Hp), resident),
            pl.BlockSpec((Hp, Gp), resident),
            pl.BlockSpec((1, Gp), resident),
        ],
        out_specs=pl.BlockSpec((B, Gp), resident),
    )

    out_padded = pl.pallas_call(
        lstm_fc_kernel,
        out_shape=jax.ShapeDtypeStruct((B, Gp), f32),
        grid_spec=grid_spec,
        compiler_params=pltpu.CompilerParams(
            dimension_semantics=("arbitrary",)),
    )(pregates, packed["whh_pad"], packed["wfc_pad"], packed["bfc_pad"])

    # Consumers that accept padded logits can skip this slice.
    return out_padded[:, :num_goals]


# --------------------------- parameter init --------------------------------- #
def init_params(key, num_nodes, num_goals, embedding_dim, hidden_dim):
    k = jax.random.split(key, 7)
    s = 1.0 / jnp.sqrt(jnp.float32(hidden_dim))
    emb = jax.random.normal(k[0], (num_nodes, embedding_dim), jnp.float32)
    emb = emb.at[0].set(0.0)   # nn.Embedding padding_idx=0 -> zero row
    u = lambda kk, shape: jax.random.uniform(kk, shape, jnp.float32, -s, s)
    return {
        "embedding": emb,
        "w_ih": u(k[1], (4 * hidden_dim, embedding_dim)),
        "w_hh": u(k[2], (4 * hidden_dim, hidden_dim)),
        "b_ih": u(k[3], (4 * hidden_dim,)),
        "b_hh": u(k[4], (4 * hidden_dim,)),
        "w_fc": u(k[5], (num_goals, hidden_dim)),
        "b_fc": u(k[6], (num_goals,)),
    }


# --------------------------- pure-JAX reference ------------------------------ #
def reference_forward(path_idxs, params):
    emb = params["embedding"]
    w_ih, w_hh = params["w_ih"], params["w_hh"]
    b = params["b_ih"] + params["b_hh"]
    H = w_hh.shape[1]
    x = emb[path_idxs]                       # (B, T, E)
    B = x.shape[0]

    def step(carry, x_t):
        h, c = carry
        gates = x_t @ w_ih.T + h @ w_hh.T + b
        i = jax.nn.sigmoid(gates[:, 0 * H:1 * H])
        f = jax.nn.sigmoid(gates[:, 1 * H:2 * H])
        g = jnp.tanh(gates[:, 2 * H:3 * H])
        o = jax.nn.sigmoid(gates[:, 3 * H:4 * H])
        c = f * c + i * g
        h = o * jnp.tanh(c)
        return (h, c), None

    h0 = jnp.zeros((B, H), jnp.float32)
    (h_last, _), _ = lax.scan(step, (h0, h0), jnp.transpose(x, (1, 0, 2)))
    return h_last @ params["w_fc"].T + params["b_fc"]


# ---------------------------------- main ------------------------------------ #
if __name__ == "__main__":
    num_nodes, num_goals = 32, 8
    embedding_dim, hidden_dim = 16, 64
    B, T = 8, 8

    key = jax.random.PRNGKey(0)
    pkey, ikey = jax.random.split(key)
    params = init_params(pkey, num_nodes, num_goals, embedding_dim, hidden_dim)
    path_idxs = jax.random.randint(ikey, (B, T), 0, num_nodes, dtype=jnp.int32)

    packed, G = prepare_params(params)          # one-time packing (off hot path)
    logits = simple_lstm_forward(path_idxs, packed, num_goals=G)
    jax.block_until_ready(logits)

    ref = reference_forward(path_idxs, params)
    assert logits.shape == (B, num_goals)
    # Slightly loosened tolerance: fused sigmoid uses 0.5*(tanh(0.5x)+1).
    assert jnp.allclose(logits, ref, atol=2e-4, rtol=2e-4), "mismatch vs reference"

    print("KERNEL_OK")
</pallas_src>

<mosaic_0001>
module attributes {stable_mosaic.version = 11 : i64} {
  func.func @lstm_fc_kernel(%arg0: i32, %arg1: memref<8x8x512xf32, #tpu.memory_space<vmem>>, %arg2: memref<128x512xf32, #tpu.memory_space<vmem>>, %arg3: memref<128x128xf32, #tpu.memory_space<vmem>>, %arg4: memref<1x128xf32, #tpu.memory_space<vmem>>, %arg5: memref<8x128xf32, #tpu.memory_space<vmem>>) attributes {dimension_semantics = [#tpu.dimension_semantics<arbitrary>], iteration_bounds = array<i64: 1>, scalar_prefetch = 0 : i64, scratch_operands = 0 : i64, tpu.core_type = #tpu.core_type<tc>, window_params = [{pipeline_mode = #tpu.pipeline_mode<synchronous>, transform_indices = @transform_0, window_bounds = array<i64: 8, 8, 512>}, {pipeline_mode = #tpu.pipeline_mode<synchronous>, transform_indices = @transform_1, window_bounds = array<i64: 128, 512>}, {pipeline_mode = #tpu.pipeline_mode<synchronous>, transform_indices = @transform_2, window_bounds = array<i64: 128, 128>}, {pipeline_mode = #tpu.pipeline_mode<synchronous>, transform_indices = @transform_3, window_bounds = array<i64: 1, 128>}, {pipeline_mode = #tpu.pipeline_mode<synchronous>, transform_indices = @transform_4, window_bounds = array<i64: 8, 128>}]} {
    %cst = arith.constant 0.000000e+00 : f32
    %0 = vector.broadcast %cst : f32 to vector<8x128xf32>
    %cst_0 = arith.constant 0.000000e+00 : f32
    %1 = vector.broadcast %cst_0 : f32 to vector<8x128xf32>
    %c0_i32 = arith.constant 0 : i32
    %2 = arith.index_cast %c0_i32 : i32 to index
    %c0 = arith.constant 0 : index
    %c0_1 = arith.constant 0 : index
    %3 = vector.load %arg1[%2, %c0, %c0_1] : memref<8x8x512xf32, #tpu.memory_space<vmem>>, vector<1x8x512xf32>
    %4 = vector.shape_cast %3 : vector<1x8x512xf32> to vector<8x512xf32>
    %c0_2 = arith.constant 0 : index
    %c0_3 = arith.constant 0 : index
    %5 = vector.load %arg2[%c0_2, %c0_3] : memref<128x512xf32, #tpu.memory_space<vmem>>, vector<128x512xf32>
    %cst_4 = arith.constant dense<0.000000e+00> : vector<8x512xf32>
    %6 = tpu.matmul %0, %5, %cst_4 {dimension_numbers = #tpu.dot_dimension_numbers<[1], [0], [0], [1], [0, 0, 1, 1], [], []>} : vector<8x128xf32>, vector<128x512xf32>, vector<8x512xf32> -> vector<8x512xf32>
    %7 = arith.addf %4, %6 : vector<8x512xf32>
    %8 = vector.extract_strided_slice %7 {offsets = [0, 0], sizes = [8, 384], strides = [1, 1]} : vector<8x512xf32> to vector<8x384xf32>
    %cst_5 = arith.constant 5.000000e-01 : f32
    %9 = vector.broadcast %cst_5 : f32 to vector<8x384xf32>
    %10 = arith.mulf %9, %8 : vector<8x384xf32>
    %11 = math.tanh %10 : vector<8x384xf32>
    %cst_6 = arith.constant 1.000000e+00 : f32
    %12 = vector.broadcast %cst_6 : f32 to vector<8x384xf32>
    %13 = arith.addf %11, %12 : vector<8x384xf32>
    %cst_7 = arith.constant 5.000000e-01 : f32
    %14 = vector.broadcast %cst_7 : f32 to vector<8x384xf32>
    %15 = arith.mulf %14, %13 : vector<8x384xf32>
    %16 = vector.extract_strided_slice %15 {offsets = [0, 0], sizes = [8, 128], strides = [1, 1]} : vector<8x384xf32> to vector<8x128xf32>
    %17 = vector.extract_strided_slice %15 {offsets = [0, 128], sizes = [8, 128], strides = [1, 1]} : vector<8x384xf32> to vector<8x128xf32>
    %18 = vector.extract_strided_slice %15 {offsets = [0, 256], sizes = [8, 128], strides = [1, 1]} : vector<8x384xf32> to vector<8x128xf32>
    %19 = vector.extract_strided_slice %7 {offsets = [0, 384], sizes = [8, 128], strides = [1, 1]} : vector<8x512xf32> to vector<8x128xf32>
    %20 = math.tanh %19 : vector<8x128xf32>
    %21 = arith.mulf %17, %1 : vector<8x128xf32>
    %22 = arith.mulf %16, %20 : vector<8x128xf32>
    %23 = arith.addf %21, %22 : vector<8x128xf32>
    %24 = math.tanh %23 : vector<8x128xf32>
    %25 = arith.mulf %18, %24 : vector<8x128xf32>
    %c1_i32 = arith.constant 1 : i32
    %26 = arith.index_cast %c1_i32 : i32 to index
    %c0_8 = arith.constant 0 : index
    %c0_9 = arith.constant 0 : index
    %27 = vector.load %arg1[%26, %c0_8, %c0_9] : memref<8x8x512xf32, #tpu.memory_space<vmem>>, vector<1x8x512xf32>
    %28 = vector.shape_cast %27 : vector<1x8x512xf32> to vector<8x512xf32>
    %c0_10 = arith.constant 0 : index
    %c0_11 = arith.constant 0 : index
    %29 = vector.load %arg2[%c0_10, %c0_11] : memref<128x512xf32, #tpu.memory_space<vmem>>, vector<128x512xf32>
    %cst_12 = arith.constant dense<0.000000e+00> : vector<8x512xf32>
    %30 = tpu.matmul %25, %29, %cst_12 {dimension_numbers = #tpu.dot_dimension_numbers<[1], [0], [0], [1], [0, 0, 1, 1], [], []>} : vector<8x128xf32>, vector<128x512xf32>, vector<8x512xf32> -> vector<8x512xf32>
    %31 = arith.addf %28, %30 : vector<8x512xf32>
    %32 = vector.extract_strided_slice %31 {offsets = [0, 0], sizes = [8, 384], strides = [1, 1]} : vector<8x512xf32> to vector<8x384xf32>
    %cst_13 = arith.constant 5.000000e-01 : f32
    %33 = vector.broadcast %cst_13 : f32 to vector<8x384xf32>
    %34 = arith.mulf %33, %32 : vector<8x384xf32>
    %35 = math.tanh %34 : vector<8x384xf32>
    %cst_14 = arith.constant 1.000000e+00 : f32
    %36 = vector.broadcast %cst_14 : f32 to vector<8x384xf32>
    %37 = arith.addf %35, %36 : vector<8x384xf32>
    %cst_15 = arith.constant 5.000000e-01 : f32
    %38 = vector.broadcast %cst_15 : f32 to vector<8x384xf32>
    %39 = arith.mulf %38, %37 : vector<8x384xf32>
    %40 = vector.extract_strided_slice %39 {offsets = [0, 0], sizes = [8, 128], strides = [1, 1]} : vector<8x384xf32> to vector<8x128xf32>
    %41 = vector.extract_strided_slice %39 {offsets = [0, 128], sizes = [8, 128], strides = [1, 1]} : vector<8x384xf32> to vector<8x128xf32>
    %42 = vector.extract_strided_slice %39 {offsets = [0, 256], sizes = [8, 128], strides = [1, 1]} : vector<8x384xf32> to vector<8x128xf32>
    %43 = vector.extract_strided_slice %31 {offsets = [0, 384], sizes = [8, 128], strides = [1, 1]} : vector<8x512xf32> to vector<8x128xf32>
    %44 = math.tanh %43 : vector<8x128xf32>
    %45 = arith.mulf %41, %23 : vector<8x128xf32>
    %46 = arith.mulf %40, %44 : vector<8x128xf32>
    %47 = arith.addf %45, %46 : vector<8x128xf32>
    %48 = math.tanh %47 : vector<8x128xf32>
    %49 = arith.mulf %42, %48 : vector<8x128xf32>
    %c2_i32 = arith.constant 2 : i32
    %50 = arith.index_cast %c2_i32 : i32 to index
    %c0_16 = arith.constant 0 : index
    %c0_17 = arith.constant 0 : index
    %51 = vector.load %arg1[%50, %c0_16, %c0_17] : memref<8x8x512xf32, #tpu.memory_space<vmem>>, vector<1x8x512xf32>
    %52 = vector.shape_cast %51 : vector<1x8x512xf32> to vector<8x512xf32>
    %c0_18 = arith.constant 0 : index
    %c0_19 = arith.constant 0 : index
    %53 = vector.load %arg2[%c0_18, %c0_19] : memref<128x512xf32, #tpu.memory_space<vmem>>, vector<128x512xf32>
    %cst_20 = arith.constant dense<0.000000e+00> : vector<8x512xf32>
    %54 = tpu.matmul %49, %53, %cst_20 {dimension_numbers = #tpu.dot_dimension_numbers<[1], [0], [0], [1], [0, 0, 1, 1], [], []>} : vector<8x128xf32>, vector<128x512xf32>, vector<8x512xf32> -> vector<8x512xf32>
    %55 = arith.addf %52, %54 : vector<8x512xf32>
    %56 = vector.extract_strided_slice %55 {offsets = [0, 0], sizes = [8, 384], strides = [1, 1]} : vector<8x512xf32> to vector<8x384xf32>
    %cst_21 = arith.constant 5.000000e-01 : f32
    %57 = vector.broadcast %cst_21 : f32 to vector<8x384xf32>
    %58 = arith.mulf %57, %56 : vector<8x384xf32>
    %59 = math.tanh %58 : vector<8x384xf32>
    %cst_22 = arith.constant 1.000000e+00 : f32
    %60 = vector.broadcast %cst_22 : f32 to vector<8x384xf32>
    %61 = arith.addf %59, %60 : vector<8x384xf32>
    %cst_23 = arith.constant 5.000000e-01 : f32
    %62 = vector.broadcast %cst_23 : f32 to vector<8x384xf32>
    %63 = arith.mulf %62, %61 : vector<8x384xf32>
    %64 = vector.extract_strided_slice %63 {offsets = [0, 0], sizes = [8, 128], strides = [1, 1]} : vector<8x384xf32> to vector<8x128xf32>
    %65 = vector.extract_strided_slice %63 {offsets = [0, 128], sizes = [8, 128], strides = [1, 1]} : vector<8x384xf32> to vector<8x128xf32>
    %66 = vector.extract_strided_slice %63 {offsets = [0, 256], sizes = [8, 128], strides = [1, 1]} : vector<8x384xf32> to vector<8x128xf32>
    %67 = vector.extract_strided_slice %55 {offsets = [0, 384], sizes = [8, 128], strides = [1, 1]} : vector<8x512xf32> to vector<8x128xf32>
    %68 = math.tanh %67 : vector<8x128xf32>
    %69 = arith.mulf %65, %47 : vector<8x128xf32>
    %70 = arith.mulf %64, %68 : vector<8x128xf32>
    %71 = arith.addf %69, %70 : vector<8x128xf32>
    %72 = math.tanh %71 : vector<8x128xf32>
    %73 = arith.mulf %66, %72 : vector<8x128xf32>
    %c3_i32 = arith.constant 3 : i32
    %74 = arith.index_cast %c3_i32 : i32 to index
    %c0_24 = arith.constant 0 : index
    %c0_25 = arith.constant 0 : index
    %75 = vector.load %arg1[%74, %c0_24, %c0_25] : memref<8x8x512xf32, #tpu.memory_space<vmem>>, vector<1x8x512xf32>
    %76 = vector.shape_cast %75 : vector<1x8x512xf32> to vector<8x512xf32>
    %c0_26 = arith.constant 0 : index
    %c0_27 = arith.constant 0 : index
    %77 = vector.load %arg2[%c0_26, %c0_27] : memref<128x512xf32, #tpu.memory_space<vmem>>, vector<128x512xf32>
    %cst_28 = arith.constant dense<0.000000e+00> : vector<8x512xf32>
    %78 = tpu.matmul %73, %77, %cst_28 {dimension_numbers = #tpu.dot_dimension_numbers<[1], [0], [0], [1], [0, 0, 1, 1], [], []>} : vector<8x128xf32>, vector<128x512xf32>, vector<8x512xf32> -> vector<8x512xf32>
    %79 = arith.addf %76, %78 : vector<8x512xf32>
    %80 = vector.extract_strided_slice %79 {offsets = [0, 0], sizes = [8, 384], strides = [1, 1]} : vector<8x512xf32> to vector<8x384xf32>
    %cst_29 = arith.constant 5.000000e-01 : f32
    %81 = vector.broadcast %cst_29 : f32 to vector<8x384xf32>
    %82 = arith.mulf %81, %80 : vector<8x384xf32>
    %83 = math.tanh %82 : vector<8x384xf32>
    %cst_30 = arith.constant 1.000000e+00 : f32
    %84 = vector.broadcast %cst_30 : f32 to vector<8x384xf32>
    %85 = arith.addf %83, %84 : vector<8x384xf32>
    %cst_31 = arith.constant 5.000000e-01 : f32
    %86 = vector.broadcast %cst_31 : f32 to vector<8x384xf32>
    %87 = arith.mulf %86, %85 : vector<8x384xf32>
    %88 = vector.extract_strided_slice %87 {offsets = [0, 0], sizes = [8, 128], strides = [1, 1]} : vector<8x384xf32> to vector<8x128xf32>
    %89 = vector.extract_strided_slice %87 {offsets = [0, 128], sizes = [8, 128], strides = [1, 1]} : vector<8x384xf32> to vector<8x128xf32>
    %90 = vector.extract_strided_slice %87 {offsets = [0, 256], sizes = [8, 128], strides = [1, 1]} : vector<8x384xf32> to vector<8x128xf32>
    %91 = vector.extract_strided_slice %79 {offsets = [0, 384], sizes = [8, 128], strides = [1, 1]} : vector<8x512xf32> to vector<8x128xf32>
    %92 = math.tanh %91 : vector<8x128xf32>
    %93 = arith.mulf %89, %71 : vector<8x128xf32>
    %94 = arith.mulf %88, %92 : vector<8x128xf32>
    %95 = arith.addf %93, %94 : vector<8x128xf32>
    %96 = math.tanh %95 : vector<8x128xf32>
    %97 = arith.mulf %90, %96 : vector<8x128xf32>
    %c4_i32 = arith.constant 4 : i32
    %98 = arith.index_cast %c4_i32 : i32 to index
    %c0_32 = arith.constant 0 : index
    %c0_33 = arith.constant 0 : index
    %99 = vector.load %arg1[%98, %c0_32, %c0_33] : memref<8x8x512xf32, #tpu.memory_space<vmem>>, vector<1x8x512xf32>
    %100 = vector.shape_cast %99 : vector<1x8x512xf32> to vector<8x512xf32>
    %c0_34 = arith.constant 0 : index
    %c0_35 = arith.constant 0 : index
    %101 = vector.load %arg2[%c0_34, %c0_35] : memref<128x512xf32, #tpu.memory_space<vmem>>, vector<128x512xf32>
    %cst_36 = arith.constant dense<0.000000e+00> : vector<8x512xf32>
    %102 = tpu.matmul %97, %101, %cst_36 {dimension_numbers = #tpu.dot_dimension_numbers<[1], [0], [0], [1], [0, 0, 1, 1], [], []>} : vector<8x128xf32>, vector<128x512xf32>, vector<8x512xf32> -> vector<8x512xf32>
    %103 = arith.addf %100, %102 : vector<8x512xf32>
    %104 = vector.extract_strided_slice %103 {offsets = [0, 0], sizes = [8, 384], strides = [1, 1]} : vector<8x512xf32> to vector<8x384xf32>
    %cst_37 = arith.constant 5.000000e-01 : f32
    %105 = vector.broadcast %cst_37 : f32 to vector<8x384xf32>
    %106 = arith.mulf %105, %104 : vector<8x384xf32>
    %107 = math.tanh %106 : vector<8x384xf32>
    %cst_38 = arith.constant 1.000000e+00 : f32
    %108 = vector.broadcast %cst_38 : f32 to vector<8x384xf32>
    %109 = arith.addf %107, %108 : vector<8x384xf32>
    %cst_39 = arith.constant 5.000000e-01 : f32
    %110 = vector.broadcast %cst_39 : f32 to vector<8x384xf32>
    %111 = arith.mulf %110, %109 : vector<8x384xf32>
    %112 = vector.extract_strided_slice %111 {offsets = [0, 0], sizes = [8, 128], strides = [1, 1]} : vector<8x384xf32> to vector<8x128xf32>
    %113 = vector.extract_strided_slice %111 {offsets = [0, 128], sizes = [8, 128], strides = [1, 1]} : vector<8x384xf32> to vector<8x128xf32>
    %114 = vector.extract_strided_slice %111 {offsets = [0, 256], sizes = [8, 128], strides = [1, 1]} : vector<8x384xf32> to vector<8x128xf32>
    %115 = vector.extract_strided_slice %103 {offsets = [0, 384], sizes = [8, 128], strides = [1, 1]} : vector<8x512xf32> to vector<8x128xf32>
    %116 = math.tanh %115 : vector<8x128xf32>
    %117 = arith.mulf %113, %95 : vector<8x128xf32>
    %118 = arith.mulf %112, %116 : vector<8x128xf32>
    %119 = arith.addf %117, %118 : vector<8x128xf32>
    %120 = math.tanh %119 : vector<8x128xf32>
    %121 = arith.mulf %114, %120 : vector<8x128xf32>
    %c5_i32 = arith.constant 5 : i32
    %122 = arith.index_cast %c5_i32 : i32 to index
    %c0_40 = arith.constant 0 : index
    %c0_41 = arith.constant 0 : index
    %123 = vector.load %arg1[%122, %c0_40, %c0_41] : memref<8x8x512xf32, #tpu.memory_space<vmem>>, vector<1x8x512xf32>
    %124 = vector.shape_cast %123 : vector<1x8x512xf32> to vector<8x512xf32>
    %c0_42 = arith.constant 0 : index
    %c0_43 = arith.constant 0 : index
    %125 = vector.load %arg2[%c0_42, %c0_43] : memref<128x512xf32, #tpu.memory_space<vmem>>, vector<128x512xf32>
    %cst_44 = arith.constant dense<0.000000e+00> : vector<8x512xf32>
    %126 = tpu.matmul %121, %125, %cst_44 {dimension_numbers = #tpu.dot_dimension_numbers<[1], [0], [0], [1], [0, 0, 1, 1], [], []>} : vector<8x128xf32>, vector<128x512xf32>, vector<8x512xf32> -> vector<8x512xf32>
    %127 = arith.addf %124, %126 : vector<8x512xf32>
    %128 = vector.extract_strided_slice %127 {offsets = [0, 0], sizes = [8, 384], strides = [1, 1]} : vector<8x512xf32> to vector<8x384xf32>
    %cst_45 = arith.constant 5.000000e-01 : f32
    %129 = vector.broadcast %cst_45 : f32 to vector<8x384xf32>
    %130 = arith.mulf %129, %128 : vector<8x384xf32>
    %131 = math.tanh %130 : vector<8x384xf32>
    %cst_46 = arith.constant 1.000000e+00 : f32
    %132 = vector.broadcast %cst_46 : f32 to vector<8x384xf32>
    %133 = arith.addf %131, %132 : vector<8x384xf32>
    %cst_47 = arith.constant 5.000000e-01 : f32
    %134 = vector.broadcast %cst_47 : f32 to vector<8x384xf32>
    %135 = arith.mulf %134, %133 : vector<8x384xf32>
    %136 = vector.extract_strided_slice %135 {offsets = [0, 0], sizes = [8, 128], strides = [1, 1]} : vector<8x384xf32> to vector<8x128xf32>
    %137 = vector.extract_strided_slice %135 {offsets = [0, 128], sizes = [8, 128], strides = [1, 1]} : vector<8x384xf32> to vector<8x128xf32>
    %138 = vector.extract_strided_slice %135 {offsets = [0, 256], sizes = [8, 128], strides = [1, 1]} : vector<8x384xf32> to vector<8x128xf32>
    %139 = vector.extract_strided_slice %127 {offsets = [0, 384], sizes = [8, 128], strides = [1, 1]} : vector<8x512xf32> to vector<8x128xf32>
    %140 = math.tanh %139 : vector<8x128xf32>
    %141 = arith.mulf %137, %119 : vector<8x128xf32>
    %142 = arith.mulf %136, %140 : vector<8x128xf32>
    %143 = arith.addf %141, %142 : vector<8x128xf32>
    %144 = math.tanh %143 : vector<8x128xf32>
    %145 = arith.mulf %138, %144 : vector<8x128xf32>
    %c6_i32 = arith.constant 6 : i32
    %146 = arith.index_cast %c6_i32 : i32 to index
    %c0_48 = arith.constant 0 : index
    %c0_49 = arith.constant 0 : index
    %147 = vector.load %arg1[%146, %c0_48, %c0_49] : memref<8x8x512xf32, #tpu.memory_space<vmem>>, vector<1x8x512xf32>
    %148 = vector.shape_cast %147 : vector<1x8x512xf32> to vector<8x512xf32>
    %c0_50 = arith.constant 0 : index
    %c0_51 = arith.constant 0 : index
    %149 = vector.load %arg2[%c0_50, %c0_51] : memref<128x512xf32, #tpu.memory_space<vmem>>, vector<128x512xf32>
    %cst_52 = arith.constant dense<0.000000e+00> : vector<8x512xf32>
    %150 = tpu.matmul %145, %149, %cst_52 {dimension_numbers = #tpu.dot_dimension_numbers<[1], [0], [0], [1], [0, 0, 1, 1], [], []>} : vector<8x128xf32>, vector<128x512xf32>, vector<8x512xf32> -> vector<8x512xf32>
    %151 = arith.addf %148, %150 : vector<8x512xf32>
    %152 = vector.extract_strided_slice %151 {offsets = [0, 0], sizes = [8, 384], strides = [1, 1]} : vector<8x512xf32> to vector<8x384xf32>
    %cst_53 = arith.constant 5.000000e-01 : f32
    %153 = vector.broadcast %cst_53 : f32 to vector<8x384xf32>
    %154 = arith.mulf %153, %152 : vector<8x384xf32>
    %155 = math.tanh %154 : vector<8x384xf32>
    %cst_54 = arith.constant 1.000000e+00 : f32
    %156 = vector.broadcast %cst_54 : f32 to vector<8x384xf32>
    %157 = arith.addf %155, %156 : vector<8x384xf32>
    %cst_55 = arith.constant 5.000000e-01 : f32
    %158 = vector.broadcast %cst_55 : f32 to vector<8x384xf32>
    %159 = arith.mulf %158, %157 : vector<8x384xf32>
    %160 = vector.extract_strided_slice %159 {offsets = [0, 0], sizes = [8, 128], strides = [1, 1]} : vector<8x384xf32> to vector<8x128xf32>
    %161 = vector.extract_strided_slice %159 {offsets = [0, 128], sizes = [8, 128], strides = [1, 1]} : vector<8x384xf32> to vector<8x128xf32>
    %162 = vector.extract_strided_slice %159 {offsets = [0, 256], sizes = [8, 128], strides = [1, 1]} : vector<8x384xf32> to vector<8x128xf32>
    %163 = vector.extract_strided_slice %151 {offsets = [0, 384], sizes = [8, 128], strides = [1, 1]} : vector<8x512xf32> to vector<8x128xf32>
    %164 = math.tanh %163 : vector<8x128xf32>
    %165 = arith.mulf %161, %143 : vector<8x128xf32>
    %166 = arith.mulf %160, %164 : vector<8x128xf32>
    %167 = arith.addf %165, %166 : vector<8x128xf32>
    %168 = math.tanh %167 : vector<8x128xf32>
    %169 = arith.mulf %162, %168 : vector<8x128xf32>
    %c7_i32 = arith.constant 7 : i32
    %170 = arith.index_cast %c7_i32 : i32 to index
    %c0_56 = arith.constant 0 : index
    %c0_57 = arith.constant 0 : index
    %171 = vector.load %arg1[%170, %c0_56, %c0_57] : memref<8x8x512xf32, #tpu.memory_space<vmem>>, vector<1x8x512xf32>
    %172 = vector.shape_cast %171 : vector<1x8x512xf32> to vector<8x512xf32>
    %c0_58 = arith.constant 0 : index
    %c0_59 = arith.constant 0 : index
    %173 = vector.load %arg2[%c0_58, %c0_59] : memref<128x512xf32, #tpu.memory_space<vmem>>, vector<128x512xf32>
    %cst_60 = arith.constant dense<0.000000e+00> : vector<8x512xf32>
    %174 = tpu.matmul %169, %173, %cst_60 {dimension_numbers = #tpu.dot_dimension_numbers<[1], [0], [0], [1], [0, 0, 1, 1], [], []>} : vector<8x128xf32>, vector<128x512xf32>, vector<8x512xf32> -> vector<8x512xf32>
    %175 = arith.addf %172, %174 : vector<8x512xf32>
    %176 = vector.extract_strided_slice %175 {offsets = [0, 0], sizes = [8, 384], strides = [1, 1]} : vector<8x512xf32> to vector<8x384xf32>
    %cst_61 = arith.constant 5.000000e-01 : f32
    %177 = vector.broadcast %cst_61 : f32 to vector<8x384xf32>
    %178 = arith.mulf %177, %176 : vector<8x384xf32>
    %179 = math.tanh %178 : vector<8x384xf32>
    %cst_62 = arith.constant 1.000000e+00 : f32
    %180 = vector.broadcast %cst_62 : f32 to vector<8x384xf32>
    %181 = arith.addf %179, %180 : vector<8x384xf32>
    %cst_63 = arith.constant 5.000000e-01 : f32
    %182 = vector.broadcast %cst_63 : f32 to vector<8x384xf32>
    %183 = arith.mulf %182, %181 : vector<8x384xf32>
    %184 = vector.extract_strided_slice %183 {offsets = [0, 0], sizes = [8, 128], strides = [1, 1]} : vector<8x384xf32> to vector<8x128xf32>
    %185 = vector.extract_strided_slice %183 {offsets = [0, 128], sizes = [8, 128], strides = [1, 1]} : vector<8x384xf32> to vector<8x128xf32>
    %186 = vector.extract_strided_slice %183 {offsets = [0, 256], sizes = [8, 128], strides = [1, 1]} : vector<8x384xf32> to vector<8x128xf32>
    %187 = vector.extract_strided_slice %175 {offsets = [0, 384], sizes = [8, 128], strides = [1, 1]} : vector<8x512xf32> to vector<8x128xf32>
    %188 = math.tanh %187 : vector<8x128xf32>
    %189 = arith.mulf %185, %167 : vector<8x128xf32>
    %190 = arith.mulf %184, %188 : vector<8x128xf32>
    %191 = arith.addf %189, %190 : vector<8x128xf32>
    %192 = math.tanh %191 : vector<8x128xf32>
    %193 = arith.mulf %186, %192 : vector<8x128xf32>
    %c8_i32 = arith.constant 8 : i32
    %c0_64 = arith.constant 0 : index
    %c0_65 = arith.constant 0 : index
    %194 = vector.load %arg3[%c0_64, %c0_65] : memref<128x128xf32, #tpu.memory_space<vmem>>, vector<128x128xf32>
    %cst_66 = arith.constant dense<0.000000e+00> : vector<8x128xf32>
    %195 = tpu.matmul %193, %194, %cst_66 {dimension_numbers = #tpu.dot_dimension_numbers<[1], [0], [0], [1], [0, 0, 1, 1], [], []>} : vector<8x128xf32>, vector<128x128xf32>, vector<8x128xf32> -> vector<8x128xf32>
    %c0_67 = arith.constant 0 : index
    %c0_68 = arith.constant 0 : index
    %196 = vector.load %arg4[%c0_67, %c0_68] : memref<1x128xf32, #tpu.memory_space<vmem>>, vector<1x128xf32>
    %197 = vector.broadcast %196 : vector<1x128xf32> to vector<8x128xf32>
    %198 = arith.addf %195, %197 : vector<8x128xf32>
    %c0_69 = arith.constant 0 : index
    %c0_70 = arith.constant 0 : index
    %199 = vector.load %arg5[%c0_69, %c0_70] : memref<8x128xf32, #tpu.memory_space<vmem>>, vector<8x128xf32>
    tpu.vector_store %arg5[%c0_69, %c0_70], %198 {strides = array<i32>} : memref<8x128xf32, #tpu.memory_space<vmem>>, vector<8x128xf32>,
    return
  }
  func.func @transform_0(%arg0: i32) -> (i32, i32, i32) {
    %c0_i32 = arith.constant 0 : i32
    %c0_i32_0 = arith.constant 0 : i32
    %c0_i32_1 = arith.constant 0 : i32
    %c0_i32_2 = arith.constant 0 : i32
    return %c0_i32, %c0_i32_0, %c0_i32_1 : i32, i32, i32
  }
  func.func @transform_1(%arg0: i32) -> (i32, i32) {
    %c0_i32 = arith.constant 0 : i32
    %c0_i32_0 = arith.constant 0 : i32
    %c0_i32_1 = arith.constant 0 : i32
    return %c0_i32, %c0_i32_0 : i32, i32
  }
  func.func @transform_2(%arg0: i32) -> (i32, i32) {
    %c0_i32 = arith.constant 0 : i32
    %c0_i32_0 = arith.constant 0 : i32
    %c0_i32_1 = arith.constant 0 : i32
    return %c0_i32, %c0_i32_0 : i32, i32
  }
  func.func @transform_3(%arg0: i32) -> (i32, i32) {
    %c0_i32 = arith.constant 0 : i32
    %c0_i32_0 = arith.constant 0 : i32
    %c0_i32_1 = arith.constant 0 : i32
    return %c0_i32, %c0_i32_0 : i32, i32
  }
  func.func @transform_4(%arg0: i32) -> (i32, i32) {
    %c0_i32 = arith.constant 0 : i32
    %c0_i32_0 = arith.constant 0 : i32
    %c0_i32_1 = arith.constant 0 : i32
    return %c0_i32, %c0_i32_0 : i32, i32
  }
}

</mosaic_0001>

<bundles_post_ra>
// kernel: simple_lstm_forward.1
= control target key start
LH: loop header
LB: loop body
LE: loop exit
PB: predicated region body
PF: predicated region fallthrough
CT: control target
= control target key end

     0   :  { %v2266_v7 = vmov 0.0   ;;  %s3013_s0 = inlined_call_operand.vmem [shape: f32[8,8,512], index: 0, kind: input, shape index: {}]   ;;  %s3014_s1 = inlined_call_operand.vmem [shape: f32[128,512], index: 1, kind: input, shape index: {}]   ;;  %s3015_s2 = inlined_call_operand.vmem [shape: f32[128,128], index: 2, kind: input, shape index: {}]   ;;  %s3016_s3 = inlined_call_operand.vmem [shape: f32[1,128], index: 3, kind: input, shape index: {}]   ;;  %s3017_s4 = inlined_call_operand.hbm [shape: f32[8,128], index: 4, kind: output, shape index: {}]  }
   0x1   :  { %v23_v0 = vld [vmem:[%s3014_s1 + $0x8] sm:$0xff]  ;;  %v22_v2 = vld [vmem:[%s3014_s1] sm:$0xff]  ;;  %150 = vmatprep.mubr.f32.mxu0 %v2266_v7  ;;  %221 = vmatprep.mubr.f32.mxu1 %v2266_v7  ;;  %v25_v12 = vld [vmem:[%s3014_s1 + $0x18] sm:$0xff] }
   0x2   :  { %v27_v1 = vld [vmem:[%s3014_s1 + $0x28] sm:$0xff]  ;;  %v26_v4 = vld [vmem:[%s3014_s1 + $0x20] sm:$0xff]  ;;  %v29_v13 = vld [vmem:[%s3014_s1 + $0x38] sm:$0xff] }
   0x3   :  { %v2304_v3 = vpack.c.bf16 %v27_v1, %v23_v0  ;;  %v31_v5 = vld [vmem:[%s3014_s1 + $0x48] sm:$0xff]  ;;  %v2317_v8 = vpack.c.bf16 %v26_v4, %v22_v2  ;;  %v30_v10 = vld [vmem:[%s3014_s1 + $0x40] sm:$0xff]  ;;  %v24_v14 = vld [vmem:[%s3014_s1 + $0x10] sm:$0xff]  ;;  %v2343_v17 = vpack.c.bf16 %v29_v13, %v25_v12 }
   0x4   :  { %v35_v6 = vld [vmem:[%s3014_s1 + $0x68] sm:$0xff]  ;;  %v34_v11 = vld [vmem:[%s3014_s1 + $0x60] sm:$0xff]  ;;  %v28_v15 = vld [vmem:[%s3014_s1 + $0x30] sm:$0xff] }
   0x5   :  { %v2319_v9 = vpack.c.bf16 %v35_v6, %v31_v5  ;;  %1623 = vmatprep.subr.bf16.mxu0 %v2304_v3  ;;  %v2341_v16 = vpack.c.bf16 %v34_v11, %v30_v10  ;;  %v2345_v18 = vpack.c.bf16 %v28_v15, %v24_v14  ;;  %v39_v19 = vld [vmem:[%s3014_s1 + $0x88] sm:$0xff]  ;;  %v38_v21 = vld [vmem:[%s3014_s1 + $0x80] sm:$0xff]  ;;  %v33_v24 = vld [vmem:[%s3014_s1 + $0x58] sm:$0xff]  ;;  %1655 = vmatprep.subr.bf16.mxu1 %v2343_v17 }
   0x6   :  { %1625 = vmatpush1.bf16.msra.mxu0 %v2317_v8  ;;  %v43_v20 = vld [vmem:[%s3014_s1 + $0xa8] sm:$0xff]  ;;  %v42_v23 = vld [vmem:[%s3014_s1 + $0xa0] sm:$0xff]  ;;  %v37_v25 = vld [vmem:[%s3014_s1 + $0x78] sm:$0xff] }
   0x7   :  { %1627 = vmatprep.subr.bf16.mxu0 %v2319_v9  ;;  %v2357_v22 = vpack.c.bf16 %v43_v20, %v39_v19  ;;  %v2369_v26 = vpack.c.bf16 %v37_v25, %v33_v24  ;;  %v32_v27 = vld [vmem:[%s3014_s1 + $0x50] sm:$0xff]  ;;  %v47_v29 = vld [vmem:[%s3014_s1 + $0xc8] sm:$0xff]  ;;  %1657 = vmatpush1.bf16.msra.mxu1 %v2345_v18  ;;  %v2387_v32 = vpack.c.bf16 %v42_v23, %v38_v21  ;;  %v41_v33 = vld [vmem:[%s3014_s1 + $0x98] sm:$0xff] }
   0x8   :  { %v36_v28 = vld [vmem:[%s3014_s1 + $0x70] sm:$0xff]  ;;  %v51_v31 = vld [vmem:[%s3014_s1 + $0xe8] sm:$0xff]  ;;  %v45_v34 = vld [vmem:[%s3014_s1 + $0xb8] sm:$0xff] }
   0x9   :  { %v2381_v30 = vpack.c.bf16 %v36_v28, %v32_v27  ;;  %1659 = vmatprep.subr.bf16.mxu1 %v2369_v26  ;;  %v40_v35 = vld [vmem:[%s3014_s1 + $0x90] sm:$0xff]  ;;  %v2400_v36 = vpack.c.bf16 %v51_v31, %v47_v29  ;;  %v46_v37 = vld [vmem:[%s3014_s1 + $0xc0] sm:$0xff]  ;;  %v2408_v39 = vpack.c.bf16 %v45_v34, %v41_v33  ;;  %v55_v41 = vld [vmem:[%s3014_s1 + $0x108] sm:$0xff] }
   0xa   :  { %1629 = vmatpush1.bf16.msra.mxu0 %v2341_v16  ;;  %v50_v38 = vld [vmem:[%s3014_s1 + $0xe0] sm:$0xff]  ;;  %v44_v40 = vld [vmem:[%s3014_s1 + $0xb0] sm:$0xff]  ;;  %v59_v42 = vld [vmem:[%s3014_s1 + $0x128] sm:$0xff] }
   0xb   :  { %1631 = vmatprep.subr.bf16.mxu0 %v2357_v22  ;;  %v49_v43 = vld [vmem:[%s3014_s1 + $0xd8] sm:$0xff]  ;;  %1661 = vmatpush1.bf16.msra.mxu1 %v2381_v30  ;;  %v2423_v44 = vpack.c.bf16 %v44_v40, %v40_v35  ;;  %v2429_v46 = vpack.c.bf16 %v50_v38, %v46_v37  ;;  %v54_v47 = vld [vmem:[%s3014_s1 + $0x100] sm:$0xff]  ;;  %v48_v49 = vld [vmem:[%s3014_s1 + $0xd0] sm:$0xff]  ;;  %v2444_v51 = vpack.c.bf16 %v59_v42, %v55_v41 }
   0xc   :  { %v53_v45 = vld [vmem:[%s3014_s1 + $0xf8] sm:$0xff]  ;;  %1663 = vmatprep.subr.bf16.mxu1 %v2408_v39  ;;  %v52_v50 = vld [vmem:[%s3014_s1 + $0xf0] sm:$0xff]  ;;  %v58_v52 = vld [vmem:[%s3014_s1 + $0x120] sm:$0xff] }
   0xd   :  { %v2435_v48 = vpack.c.bf16 %v53_v45, %v49_v43  ;;  %v57_v53 = vld [vmem:[%s3014_s1 + $0x118] sm:$0xff]  ;;  %v63_v55 = vld [vmem:[%s3014_s1 + $0x148] sm:$0xff]  ;;  %v2462_v57 = vpack.c.bf16 %v52_v50, %v48_v49  ;;  %v2465_v58 = vpack.c.bf16 %v58_v52, %v54_v47  ;;  %v62_v59 = vld [vmem:[%s3014_s1 + $0x140] sm:$0xff] }
   0xe   :  { %1633 = vmatpush1.bf16.msra.mxu0 %v2387_v32  ;;  %v61_v54 = vld [vmem:[%s3014_s1 + $0x138] sm:$0xff]  ;;  %v67_v56 = vld [vmem:[%s3014_s1 + $0x168] sm:$0xff]  ;;  %v56_v61 = vld [vmem:[%s3014_s1 + $0x110] sm:$0xff] }
   0xf   :  { %1635 = vmatprep.subr.bf16.mxu0 %v2400_v36  ;;  %1665 = vmatpush1.bf16.msra.mxu1 %v2423_v44  ;;  %v2471_v60 = vpack.c.bf16 %v61_v54, %v57_v53  ;;  %v60_v62 = vld [vmem:[%s3014_s1 + $0x130] sm:$0xff]  ;;  %v2480_v63 = vpack.c.bf16 %v67_v56, %v63_v55  ;;  %v66_v0 = vld [vmem:[%s3014_s1 + $0x160] sm:$0xff]  ;;  %v65_v1 = vld [vmem:[%s3014_s1 + $0x158] sm:$0xff] }
  0x10   :  { %1667 = vmatprep.subr.bf16.mxu1 %v2435_v48  ;;  %v69_v2 = vld [vmem:[%s3014_s1 + $0x178] sm:$0xff]  ;;  %v71_v4 = vld [vmem:[%s3014_s1 + $0x188] sm:$0xff]  ;;  %v2498_v6 = vpack.c.bf16 %v60_v62, %v56_v61  ;;  %v70_v10 = vld [vmem:[%s3014_s1 + $0x180] sm:$0xff]  ;;  %v2504_v11 = vpack.c.bf16 %v66_v0, %v62_v59 }
  0x11   :  { %v75_v5 = vld [vmem:[%s3014_s1 + $0x1a8] sm:$0xff]  ;;  %v74_v12 = vld [vmem:[%s3014_s1 + $0x1a0] sm:$0xff]  ;;  %v2510_v13 = vpack.c.bf16 %v69_v2, %v65_v1  ;;  %v64_v14 = vld [vmem:[%s3014_s1 + $0x150] sm:$0xff] }
  0x12   :  { %1637 = vmatpush1.bf16.msra.mxu0 %v2429_v46  ;;  %v68_v15 = vld [vmem:[%s3014_s1 + $0x170] sm:$0xff]  ;;  %v2519_v19 = vpack.c.bf16 %v75_v5, %v71_v4  ;;  %v73_v20 = vld [vmem:[%s3014_s1 + $0x198] sm:$0xff] }
  0x13   :  { %1639 = vmatprep.subr.bf16.mxu0 %v2444_v51  ;;  %1669 = vmatpush1.bf16.msra.mxu1 %v2462_v57  ;;  %v77_v21 = vld [vmem:[%s3014_s1 + $0x1b8] sm:$0xff] }
  0x14   :  { %1671 = vmatprep.subr.bf16.mxu1 %v2471_v60 }
  0x16   :  { %1641 = vmatpush1.bf16.msra.mxu0 %v2465_v58 }
  0x17   :  { %1643 = vmatprep.subr.bf16.mxu0 %v2480_v63 }
  0x18   :  { %9 = vsyncpa [#allocation3], 0  ;;  %v79_v23 = vld [vmem:[%s3014_s1 + $0x1c8] sm:$0xff]  ;;  %1673 = vmatpush1.bf16.msra.mxu1 %v2498_v6  ;;  %v2534_v25 = vpack.c.bf16 %v68_v15, %v64_v14  ;;  %v2537_v27 = vpack.c.bf16 %v74_v12, %v70_v10  ;;  %v78_v28 = vld [vmem:[%s3014_s1 + $0x1c0] sm:$0xff]  ;;  %v2543_v29 = vpack.c.bf16 %v77_v21, %v73_v20  ;;  %vm2268_vm0 = vmmov 0   ;;  %s2269_s27 = smov [#allocation2]  }
  0x19   :  { %v83_v24 = vld [vmem:[%s3014_s1 + $0x1e8] sm:$0xff]  ;;  %1675 = vmatprep.subr.bf16.mxu1 %v2510_v13  ;;  %v72_v31 = vld [vmem:[%s3014_s1 + $0x190] sm:$0xff]  ;;  %v82_v35 = vld [vmem:[%s3014_s1 + $0x1e0] sm:$0xff]  ;;  %s1533_s28 = sshll.u32 %s2269_s27, 4  ;;  %s1534_s28 = int_to_ptr.vmem [resolvable:$true] %s1533_s28 }
  0x1a   :  { %1645 = vmatpush1.bf16.msra.mxu0 %v2504_v11  ;;  %v76_v33 = vld [vmem:[%s3014_s1 + $0x1b0] sm:$0xff]  ;;  %v2552_v34 = vpack.c.bf16 %v83_v24, %v79_v23  ;;  %v81_v37 = vld [vmem:[%s3014_s1 + $0x1d8] sm:$0xff]  ;;  %v2567_v41 = vpack.c.bf16 %v82_v35, %v78_v28  ;;  %v18_v49 = vld [vmem:[%s3013_s0] sm:$0xff]  ;;  %s2242_s29 = scalar_lea.vmem %s1534_s28, 128  ;;  %p2247_p1 = scmp.lt.s32.totalorder %s1534_s28, %s1534_s28 }
  0x1b   :  { %1647 = vmatprep.subr.bf16.mxu0 %v2519_v19  ;;  %v85_v38 = vld [vmem:[%s3014_s1 + $0x1f8] sm:$0xff]  ;;  %v2564_v40 = vpack.c.bf16 %v76_v33, %v72_v31  ;;  %v80_v43 = vld [vmem:[%s3014_s1 + $0x1d0] sm:$0xff]  ;;  %v19_v50 = vld [vmem:[%s3013_s0 + $0x8] sm:$0xff]  ;;  %p2243_p0 = scmp.ne.s32.totalorder %s1534_s28, %s2242_s29  ;;  %p2248_p2 = scmp.lt.s32.totalorder %s2242_s29, %s2242_s29 }
  0x1c   :  { %1677 = vmatpush1.bf16.msra.mxu1 %v2534_v25  ;;  %v2570_v42 = vpack.c.bf16 %v85_v38, %v81_v37  ;;  %v84_v45 = vld [vmem:[%s3014_s1 + $0x1f0] sm:$0xff]  ;;  %v21_v56 = vld [vmem:[%s3013_s0 + $0x18] sm:$0xff] }
  0x1d   :  { %1679 = vmatprep.subr.bf16.mxu1 %v2543_v29  ;;  %v2580_v47 = vpack.c.bf16 %v84_v45, %v80_v43  ;;  %v20_v2 = vld [vmem:[%s3013_s0 + $0x10] sm:$0xff]  ;;  %v1541_v45 = vld [vmem:[%s3013_s0 + $0x20] sm:$0xff]  ;;  %p2249_p3 = por %p2248_p2, %p2247_p1 }
  0x1e   :  { %1649 = vmatpush1.bf16.msra.mxu0 %v2537_v27 }
  0x1f   :  { %1651 = vmatprep.subr.bf16.mxu0 %v2552_v34  ;;  %p2250_p4 = pnand %p2249_p3, %p2243_p0 }
  0x20   :  { %1681 = vmatpush1.bf16.msra.mxu1 %v2564_v40 }
  0x21   :  { %1683 = vmatprep.subr.bf16.mxu1 %v2570_v42 }
  0x22   :  { %1653 = vmatpush1.bf16.msra.mxu0 %v2567_v41 }
  0x23   :  { %1687 = vmatprep.subr.bf16.mxu0 %v2304_v3 }
  0x24   :  { %1685 = vmatpush1.bf16.msra.mxu1 %v2580_v47 }
  0x25   :  { %151 = vmatmul.mubr.f32.vlgmr.msra.gmra.mrb[0].mxu0 %v2266_v7  ;;  %1719 = vmatprep.subr.bf16.mxu1 %v2343_v17 }
  0x26   :  { %1689 = vmatpush1.bf16.msra.mxu0 %v2317_v8  ;;  %319 = vmatprep.mubr.f32.mxu0 %v2266_v7 }
  0x27   :  { %1691 = vmatprep.subr.bf16.mxu0 %v2319_v9  ;;  %222 = vmatmul.mubr.f32.vlgmr.msra.gmra.mrb[0].mxu1 %v2266_v7 }
  0x28   :  { %1721 = vmatpush1.bf16.msra.mxu1 %v2345_v18  ;;  %390 = vmatprep.mubr.f32.mxu1 %v2266_v7 }
  0x29   :  { %1723 = vmatprep.subr.bf16.mxu1 %v2369_v26 }
  0x2a   :  { %1693 = vmatpush1.bf16.msra.mxu0 %v2341_v16 }
  0x2b   :  { %1695 = vmatprep.subr.bf16.mxu0 %v2357_v22 }
  0x2c   :  { %1725 = vmatpush1.bf16.msra.mxu1 %v2381_v30 }
  0x2d   :  { %1727 = vmatprep.subr.bf16.mxu1 %v2408_v39 }
  0x2e   :  { %1697 = vmatpush1.bf16.msra.mxu0 %v2387_v32 }
  0x2f   :  { %1699 = vmatprep.subr.bf16.mxu0 %v2400_v36 }
  0x30   :  { %1729 = vmatpush1.bf16.msra.mxu1 %v2423_v44 }
  0x31   :  { %1731 = vmatprep.subr.bf16.mxu1 %v2435_v48 }
  0x32   :  { %1701 = vmatpush1.bf16.msra.mxu0 %v2429_v46 }
  0x33   :  { %1703 = vmatprep.subr.bf16.mxu0 %v2444_v51 }
  0x34   :  { %1733 = vmatpush1.bf16.msra.mxu1 %v2462_v57 }
  0x35   :  { %1735 = vmatprep.subr.bf16.mxu1 %v2471_v60 }
  0x36   :  { %1705 = vmatpush1.bf16.msra.mxu0 %v2465_v58 }
  0x37   :  { %1707 = vmatprep.subr.bf16.mxu0 %v2480_v63 }
  0x38   :  { %1737 = vmatpush1.bf16.msra.mxu1 %v2498_v6 }
  0x39   :  { %1739 = vmatprep.subr.bf16.mxu1 %v2510_v13 }
  0x3a   :  { %1709 = vmatpush1.bf16.msra.mxu0 %v2504_v11 }
  0x3b   :  { %1711 = vmatprep.subr.bf16.mxu0 %v2519_v19 }
  0x3c   :  { %1741 = vmatpush1.bf16.msra.mxu1 %v2534_v25 }
  0x3d   :  { %1743 = vmatprep.subr.bf16.mxu1 %v2543_v29 }
  0x3e   :  { %1713 = vmatpush1.bf16.msra.mxu0 %v2537_v27 }
  0x3f   :  { %1715 = vmatprep.subr.bf16.mxu0 %v2552_v34 }
  0x40   :  { %1745 = vmatpush1.bf16.msra.mxu1 %v2564_v40 }
  0x41   :  { %1747 = vmatprep.subr.bf16.mxu1 %v2570_v42 }
  0x42   :  { %1717 = vmatpush1.bf16.msra.mxu0 %v2567_v41 }
  0x43   :  { %1751 = vmatprep.subr.bf16.mxu0 %v2304_v3 }
  0x44   :  { %1749 = vmatpush1.bf16.msra.mxu1 %v2580_v47 }
  0x45   :  { %1783 = vmatprep.subr.bf16.mxu1 %v2343_v17 }
  0xf8   :  { %v152_v52 = vpop.f32.mrb[0].mxu0 }
  0xf9   :  { %v228_v53 = vadd.f32 %v152_v52, %v18_v49  ;;  %v154_v54 = vpop.f32.mrb[1].mxu0  ;;  %v1542_v49 = vld [vmem:[%s3013_s0 + $0x28] sm:$0xff] }
  0xfa   :  { %v229_v55 = vadd.f32 %v154_v54, %v19_v50  ;;  %v223_v61 = vpop.f32.mrb[0].mxu1 }
  0xfb   :  { %v232_v59 = vmul.f32 0.5, %v228_v53  ;;  %v225_v0 = vpop.f32.mrb[1].mxu1  ;;  %v230_v4 = vadd.f32 %v223_v61, %v20_v2 }
  0xfc   :  { %v233_v62 = vmul.f32 0.5, %v229_v55  ;;  %v231_v1 = vadd.f32 %v225_v0, %v21_v56 }
  0xfd   :  { %2162 = vtanh.f32 %v232_v59  ;;  %v234_v5 = vmul.f32 0.5, %v230_v4  ;;  %v1544_v59 = vld [vmem:[%s3013_s0 + $0x38] sm:$0xff] }
  0xfe   :  { %2164 = vtanh.f32 %v233_v62 }
  0xff   :  { %2166 = vtanh.f32 %v231_v1  ;;  %v1543_v1 = vld [vmem:[%s3013_s0 + $0x30] sm:$0xff] }
 0x100   :  { %2168 = vtanh.f32 %v234_v5 }
 0x107   :  { %v2163_v10 = vpop.eup %2162 }
 0x108   :  { %v2165_v12 = vpop.eup %2164  ;;  %v238_v14 = vadd.f32 1.0, %v2163_v10 }
 0x109   :  { %v2167_v15 = vpop.eup %2166  ;;  %v239_v20 = vadd.f32 1.0, %v2165_v12 }
 0x10a   :  { %v241_v21 = vmul.f32 0.5, %v238_v14  ;;  %v2169_v33 = vpop.eup %2168 }
 0x10b   :  { %v242_v23 = vmul.f32 0.5, %v239_v20  ;;  %v240_v35 = vadd.f32 1.0, %v2169_v33 }
 0x10c   :  { %v246_v24 = vmul.f32 %v2167_v15, %v241_v21 }
 0x10d   :  { %v245_v28 = vmul.f32 0.0, %v242_v23  ;;  %v243_v37 = vmul.f32 0.5, %v240_v35 }
 0x10f   :  { %v2635_v31 = vadd.f32 %v246_v24, %v245_v28 }
 0x111   :  { %2170 = vtanh.f32 %v2635_v31 }
 0x11b   :  { %v2171_v38 = vpop.eup %2170 }
 0x11c   :  { %v249_v43 = vmul.f32 %v2171_v38, %v243_v37 }
 0x11e   :  { %320 = vmatmul.mubr.f32.vlgmr.msra.gmra.mrb[2].mxu0 %v249_v43  ;;  %391 = vmatmul.mubr.f32.vlgmr.msra.gmra.mrb[2].mxu1 %v249_v43 }
 0x11f   :  { %1753 = vmatpush1.bf16.msra.mxu0 %v2317_v8  ;;  %1785 = vmatpush1.bf16.msra.mxu1 %v2345_v18 }
 0x120   :  { %1755 = vmatprep.subr.bf16.mxu0 %v2319_v9  ;;  %1787 = vmatprep.subr.bf16.mxu1 %v2369_v26 }
 0x121   :  { %488 = vmatprep.mubr.f32.mxu0 %v2266_v7  ;;  %559 = vmatprep.mubr.f32.mxu1 %v2266_v7 }
 0x123   :  { %1757 = vmatpush1.bf16.msra.mxu0 %v2341_v16  ;;  %1789 = vmatpush1.bf16.msra.mxu1 %v2381_v30 }
 0x124   :  { %1759 = vmatprep.subr.bf16.mxu0 %v2357_v22  ;;  %1791 = vmatprep.subr.bf16.mxu1 %v2408_v39 }
 0x127   :  { %1761 = vmatpush1.bf16.msra.mxu0 %v2387_v32  ;;  %1793 = vmatpush1.bf16.msra.mxu1 %v2423_v44 }
 0x128   :  { %1763 = vmatprep.subr.bf16.mxu0 %v2400_v36  ;;  %1795 = vmatprep.subr.bf16.mxu1 %v2435_v48 }
 0x12b   :  { %1765 = vmatpush1.bf16.msra.mxu0 %v2429_v46  ;;  %1797 = vmatpush1.bf16.msra.mxu1 %v2462_v57 }
 0x12c   :  { %1767 = vmatprep.subr.bf16.mxu0 %v2444_v51  ;;  %1799 = vmatprep.subr.bf16.mxu1 %v2471_v60 }
 0x12f   :  { %1769 = vmatpush1.bf16.msra.mxu0 %v2465_v58  ;;  %1801 = vmatpush1.bf16.msra.mxu1 %v2498_v6 }
 0x130   :  { %1771 = vmatprep.subr.bf16.mxu0 %v2480_v63  ;;  %1803 = vmatprep.subr.bf16.mxu1 %v2510_v13 }
 0x133   :  { %1773 = vmatpush1.bf16.msra.mxu0 %v2504_v11  ;;  %1805 = vmatpush1.bf16.msra.mxu1 %v2534_v25 }
 0x134   :  { %1775 = vmatprep.subr.bf16.mxu0 %v2519_v19  ;;  %1807 = vmatprep.subr.bf16.mxu1 %v2543_v29 }
 0x137   :  { %1777 = vmatpush1.bf16.msra.mxu0 %v2537_v27  ;;  %1809 = vmatpush1.bf16.msra.mxu1 %v2564_v40 }
 0x138   :  { %1779 = vmatprep.subr.bf16.mxu0 %v2552_v34  ;;  %1811 = vmatprep.subr.bf16.mxu1 %v2570_v42 }
 0x13b   :  { %1781 = vmatpush1.bf16.msra.mxu0 %v2567_v41  ;;  %1813 = vmatpush1.bf16.msra.mxu1 %v2580_v47 }
 0x13c   :  { %1815 = vmatprep.subr.bf16.mxu0 %v2304_v3  ;;  %1847 = vmatprep.subr.bf16.mxu1 %v2343_v17 }
 0x1f1   :  { %v321_v50 = vpop.f32.mrb[2].mxu0  ;;  %v392_v52 = vpop.f32.mrb[2].mxu1 }
 0x1f2   :  { %v397_v53 = vadd.f32 %v1541_v45, %v321_v50  ;;  %v323_v54 = vpop.f32.mrb[3].mxu0  ;;  %v394_v55 = vpop.f32.mrb[3].mxu1  ;;  %v399_v2 = vadd.f32 %v1543_v1, %v392_v52  ;;  %v1546_v45 = vld [vmem:[%s3013_s0 + $0x48] sm:$0xff] }
 0x1f3   :  { %v398_v56 = vadd.f32 %v1542_v49, %v323_v54  ;;  %v400_v0 = vadd.f32 %v1544_v59, %v394_v55 }
 0x1f4   :  { %v401_v61 = vmul.f32 0.5, %v397_v53  ;;  %v403_v4 = vmul.f32 0.5, %v399_v2 }
 0x1f5   :  { %v402_v62 = vmul.f32 0.5, %v398_v56  ;;  %v1548_v56 = vld [vmem:[%s3013_s0 + $0x58] sm:$0xff] }
 0x1f6   :  { %2172 = vtanh.f32 %v401_v61 }
 0x1f7   :  { %2174 = vtanh.f32 %v402_v62 }
 0x1f8   :  { %2176 = vtanh.f32 %v400_v0  ;;  %v1547_v0 = vld [vmem:[%s3013_s0 + $0x50] sm:$0xff] }
 0x1f9   :  { %2178 = vtanh.f32 %v403_v4 }
 0x200   :  { %v2173_v5 = vpop.eup %2172 }
 0x201   :  { %v407_v10 = vadd.f32 1.0, %v2173_v5  ;;  %v2175_v12 = vpop.eup %2174 }
 0x202   :  { %v408_v15 = vadd.f32 1.0, %v2175_v12  ;;  %v2177_v20 = vpop.eup %2176 }
 0x203   :  { %v410_v14 = vmul.f32 0.5, %v407_v10  ;;  %v2179_v33 = vpop.eup %2178 }
 0x204   :  { %v411_v21 = vmul.f32 0.5, %v408_v15  ;;  %v409_v35 = vadd.f32 1.0, %v2179_v33 }
 0x205   :  { %v415_v23 = vmul.f32 %v2177_v20, %v410_v14 }
 0x206   :  { %v414_v24 = vmul.f32 %v411_v21, %v2635_v31  ;;  %v412_v37 = vmul.f32 0.5, %v409_v35  ;;  %v1545_v31 = vld [vmem:[%s3013_s0 + $0x40] sm:$0xff] }
 0x208   :  { %v2685_v28 = vadd.f32 %v415_v23, %v414_v24 }
 0x20a   :  { %2180 = vtanh.f32 %v2685_v28 }
 0x214   :  { %v2181_v38 = vpop.eup %2180 }
 0x215   :  { %v418_v43 = vmul.f32 %v2181_v38, %v412_v37 }
 0x217   :  { %489 = vmatmul.mubr.f32.vlgmr.msra.gmra.mrb[4].mxu0 %v418_v43  ;;  %560 = vmatmul.mubr.f32.vlgmr.msra.gmra.mrb[4].mxu1 %v418_v43 }
 0x218   :  { %1817 = vmatpush1.bf16.msra.mxu0 %v2317_v8  ;;  %1849 = vmatpush1.bf16.msra.mxu1 %v2345_v18 }
 0x219   :  { %1819 = vmatprep.subr.bf16.mxu0 %v2319_v9  ;;  %1851 = vmatprep.subr.bf16.mxu1 %v2369_v26 }
 0x21a   :  { %657 = vmatprep.mubr.f32.mxu0 %v2266_v7  ;;  %728 = vmatprep.mubr.f32.mxu1 %v2266_v7 }
 0x21c   :  { %1821 = vmatpush1.bf16.msra.mxu0 %v2341_v16  ;;  %1853 = vmatpush1.bf16.msra.mxu1 %v2381_v30 }
 0x21d   :  { %1823 = vmatprep.subr.bf16.mxu0 %v2357_v22  ;;  %1855 = vmatprep.subr.bf16.mxu1 %v2408_v39 }
 0x220   :  { %1825 = vmatpush1.bf16.msra.mxu0 %v2387_v32  ;;  %1857 = vmatpush1.bf16.msra.mxu1 %v2423_v44 }
 0x221   :  { %1827 = vmatprep.subr.bf16.mxu0 %v2400_v36  ;;  %1859 = vmatprep.subr.bf16.mxu1 %v2435_v48 }
 0x224   :  { %1829 = vmatpush1.bf16.msra.mxu0 %v2429_v46  ;;  %1861 = vmatpush1.bf16.msra.mxu1 %v2462_v57 }
 0x225   :  { %1831 = vmatprep.subr.bf16.mxu0 %v2444_v51  ;;  %1863 = vmatprep.subr.bf16.mxu1 %v2471_v60 }
 0x228   :  { %1833 = vmatpush1.bf16.msra.mxu0 %v2465_v58  ;;  %1865 = vmatpush1.bf16.msra.mxu1 %v2498_v6 }
 0x229   :  { %1835 = vmatprep.subr.bf16.mxu0 %v2480_v63  ;;  %1867 = vmatprep.subr.bf16.mxu1 %v2510_v13 }
 0x22c   :  { %1837 = vmatpush1.bf16.msra.mxu0 %v2504_v11  ;;  %1869 = vmatpush1.bf16.msra.mxu1 %v2534_v25 }
 0x22d   :  { %1839 = vmatprep.subr.bf16.mxu0 %v2519_v19  ;;  %1871 = vmatprep.subr.bf16.mxu1 %v2543_v29 }
 0x230   :  { %1841 = vmatpush1.bf16.msra.mxu0 %v2537_v27  ;;  %1873 = vmatpush1.bf16.msra.mxu1 %v2564_v40 }
 0x231   :  { %1843 = vmatprep.subr.bf16.mxu0 %v2552_v34  ;;  %1875 = vmatprep.subr.bf16.mxu1 %v2570_v42 }
 0x234   :  { %1845 = vmatpush1.bf16.msra.mxu0 %v2567_v41  ;;  %1877 = vmatpush1.bf16.msra.mxu1 %v2580_v47 }
 0x235   :  { %1879 = vmatprep.subr.bf16.mxu0 %v2304_v3  ;;  %1911 = vmatprep.subr.bf16.mxu1 %v2343_v17 }
 0x2ea   :  { %v490_v49 = vpop.f32.mrb[4].mxu0  ;;  %v561_v50 = vpop.f32.mrb[4].mxu1 }
 0x2eb   :  { %v566_v52 = vadd.f32 %v1545_v31, %v490_v49  ;;  %v492_v53 = vpop.f32.mrb[5].mxu0  ;;  %v563_v54 = vpop.f32.mrb[5].mxu1  ;;  %v568_v1 = vadd.f32 %v1547_v0, %v561_v50  ;;  %v1550_v31 = vld [vmem:[%s3013_s0 + $0x68] sm:$0xff] }
 0x2ec   :  { %v567_v55 = vadd.f32 %v1546_v45, %v492_v53  ;;  %v569_v62 = vadd.f32 %v1548_v56, %v563_v54 }
 0x2ed   :  { %v570_v59 = vmul.f32 0.5, %v566_v52  ;;  %v572_v2 = vmul.f32 0.5, %v568_v1 }
 0x2ee   :  { %v571_v61 = vmul.f32 0.5, %v567_v55  ;;  %v1552_v55 = vld [vmem:[%s3013_s0 + $0x78] sm:$0xff] }
 0x2ef   :  { %2182 = vtanh.f32 %v570_v59 }
 0x2f0   :  { %2184 = vtanh.f32 %v571_v61 }
 0x2f1   :  { %2186 = vtanh.f32 %v569_v62  ;;  %v1551_v62 = vld [vmem:[%s3013_s0 + $0x70] sm:$0xff] }
 0x2f2   :  { %2188 = vtanh.f32 %v572_v2 }
 0x2f9   :  { %v2183_v4 = vpop.eup %2182 }
 0x2fa   :  { %v576_v5 = vadd.f32 1.0, %v2183_v4  ;;  %v2185_v10 = vpop.eup %2184 }
 0x2fb   :  { %v577_v14 = vadd.f32 1.0, %v2185_v10  ;;  %v2187_v15 = vpop.eup %2186 }
 0x2fc   :  { %v579_v12 = vmul.f32 0.5, %v576_v5  ;;  %v2189_v33 = vpop.eup %2188 }
 0x2fd   :  { %v580_v20 = vmul.f32 0.5, %v577_v14  ;;  %v578_v35 = vadd.f32 1.0, %v2189_v33 }
 0x2fe   :  { %v584_v21 = vmul.f32 %v2187_v15, %v579_v12 }
 0x2ff   :  { %v583_v23 = vmul.f32 %v580_v20, %v2685_v28  ;;  %v581_v37 = vmul.f32 0.5, %v578_v35  ;;  %v1549_v28 = vld [vmem:[%s3013_s0 + $0x60] sm:$0xff] }
 0x301   :  { %v2735_v24 = vadd.f32 %v584_v21, %v583_v23 }
 0x303   :  { %2190 = vtanh.f32 %v2735_v24 }
 0x30d   :  { %v2191_v38 = vpop.eup %2190 }
 0x30e   :  { %v587_v43 = vmul.f32 %v2191_v38, %v581_v37 }
 0x310   :  { %658 = vmatmul.mubr.f32.vlgmr.msra.gmra.mrb[6].mxu0 %v587_v43  ;;  %729 = vmatmul.mubr.f32.vlgmr.msra.gmra.mrb[6].mxu1 %v587_v43 }
 0x311   :  { %1881 = vmatpush1.bf16.msra.mxu0 %v2317_v8  ;;  %1913 = vmatpush1.bf16.msra.mxu1 %v2345_v18 }
 0x312   :  { %1883 = vmatprep.subr.bf16.mxu0 %v2319_v9  ;;  %1915 = vmatprep.subr.bf16.mxu1 %v2369_v26 }
 0x313   :  { %826 = vmatprep.mubr.f32.mxu0 %v2266_v7  ;;  %897 = vmatprep.mubr.f32.mxu1 %v2266_v7 }
 0x315   :  { %1885 = vmatpush1.bf16.msra.mxu0 %v2341_v16  ;;  %1917 = vmatpush1.bf16.msra.mxu1 %v2381_v30 }
 0x316   :  { %1887 = vmatprep.subr.bf16.mxu0 %v2357_v22  ;;  %1919 = vmatprep.subr.bf16.mxu1 %v2408_v39 }
 0x319   :  { %1889 = vmatpush1.bf16.msra.mxu0 %v2387_v32  ;;  %1921 = vmatpush1.bf16.msra.mxu1 %v2423_v44 }
 0x31a   :  { %1891 = vmatprep.subr.bf16.mxu0 %v2400_v36  ;;  %1923 = vmatprep.subr.bf16.mxu1 %v2435_v48 }
 0x31d   :  { %1893 = vmatpush1.bf16.msra.mxu0 %v2429_v46  ;;  %1925 = vmatpush1.bf16.msra.mxu1 %v2462_v57 }
 0x31e   :  { %1895 = vmatprep.subr.bf16.mxu0 %v2444_v51  ;;  %1927 = vmatprep.subr.bf16.mxu1 %v2471_v60 }
 0x321   :  { %1897 = vmatpush1.bf16.msra.mxu0 %v2465_v58  ;;  %1929 = vmatpush1.bf16.msra.mxu1 %v2498_v6 }
 0x322   :  { %1899 = vmatprep.subr.bf16.mxu0 %v2480_v63  ;;  %1931 = vmatprep.subr.bf16.mxu1 %v2510_v13 }
 0x325   :  { %1901 = vmatpush1.bf16.msra.mxu0 %v2504_v11  ;;  %1933 = vmatpush1.bf16.msra.mxu1 %v2534_v25 }
 0x326   :  { %1903 = vmatprep.subr.bf16.mxu0 %v2519_v19  ;;  %1935 = vmatprep.subr.bf16.mxu1 %v2543_v29 }
 0x329   :  { %1905 = vmatpush1.bf16.msra.mxu0 %v2537_v27  ;;  %1937 = vmatpush1.bf16.msra.mxu1 %v2564_v40 }
 0x32a   :  { %1907 = vmatprep.subr.bf16.mxu0 %v2552_v34  ;;  %1939 = vmatprep.subr.bf16.mxu1 %v2570_v42 }
 0x32d   :  { %1909 = vmatpush1.bf16.msra.mxu0 %v2567_v41  ;;  %1941 = vmatpush1.bf16.msra.mxu1 %v2580_v47 }
 0x32e   :  { %1943 = vmatprep.subr.bf16.mxu0 %v2304_v3  ;;  %1975 = vmatprep.subr.bf16.mxu1 %v2343_v17 }
 0x3e3   :  { %v659_v45 = vpop.f32.mrb[6].mxu0  ;;  %v730_v49 = vpop.f32.mrb[6].mxu1 }
 0x3e4   :  { %v735_v50 = vadd.f32 %v1549_v28, %v659_v45  ;;  %v661_v52 = vpop.f32.mrb[7].mxu0  ;;  %v732_v53 = vpop.f32.mrb[7].mxu1  ;;  %v737_v0 = vadd.f32 %v1551_v62, %v730_v49  ;;  %v1554_v28 = vld [vmem:[%s3013_s0 + $0x88] sm:$0xff] }
 0x3e5   :  { %v736_v54 = vadd.f32 %v1550_v31, %v661_v52  ;;  %v738_v61 = vadd.f32 %v1552_v55, %v732_v53 }
 0x3e6   :  { %v739_v56 = vmul.f32 0.5, %v735_v50  ;;  %v741_v1 = vmul.f32 0.5, %v737_v0 }
 0x3e7   :  { %v740_v59 = vmul.f32 0.5, %v736_v54  ;;  %v1556_v54 = vld [vmem:[%s3013_s0 + $0x98] sm:$0xff] }
 0x3e8   :  { %2192 = vtanh.f32 %v739_v56 }
 0x3e9   :  { %2194 = vtanh.f32 %v740_v59 }
 0x3ea   :  { %2196 = vtanh.f32 %v738_v61  ;;  %v1555_v61 = vld [vmem:[%s3013_s0 + $0x90] sm:$0xff] }
 0x3eb   :  { %2198 = vtanh.f32 %v741_v1 }
 0x3f2   :  { %v2193_v2 = vpop.eup %2192 }
 0x3f3   :  { %v745_v4 = vadd.f32 1.0, %v2193_v2  ;;  %v2195_v5 = vpop.eup %2194 }
 0x3f4   :  { %v746_v12 = vadd.f32 1.0, %v2195_v5  ;;  %v2197_v14 = vpop.eup %2196 }
 0x3f5   :  { %v748_v10 = vmul.f32 0.5, %v745_v4  ;;  %v2199_v33 = vpop.eup %2198 }
 0x3f6   :  { %v749_v15 = vmul.f32 0.5, %v746_v12  ;;  %v747_v35 = vadd.f32 1.0, %v2199_v33 }
 0x3f7   :  { %v753_v20 = vmul.f32 %v2197_v14, %v748_v10 }
 0x3f8   :  { %v752_v21 = vmul.f32 %v749_v15, %v2735_v24  ;;  %v750_v37 = vmul.f32 0.5, %v747_v35  ;;  %v1553_v24 = vld [vmem:[%s3013_s0 + $0x80] sm:$0xff] }
 0x3fa   :  { %v2785_v23 = vadd.f32 %v753_v20, %v752_v21 }
 0x3fc   :  { %2200 = vtanh.f32 %v2785_v23 }
 0x406   :  { %v2201_v38 = vpop.eup %2200 }
 0x407   :  { %v756_v43 = vmul.f32 %v2201_v38, %v750_v37 }
 0x409   :  { %827 = vmatmul.mubr.f32.vlgmr.msra.gmra.mrb[8].mxu0 %v756_v43  ;;  %898 = vmatmul.mubr.f32.vlgmr.msra.gmra.mrb[8].mxu1 %v756_v43 }
 0x40a   :  { %1945 = vmatpush1.bf16.msra.mxu0 %v2317_v8  ;;  %1977 = vmatpush1.bf16.msra.mxu1 %v2345_v18 }
 0x40b   :  { %1947 = vmatprep.subr.bf16.mxu0 %v2319_v9  ;;  %1979 = vmatprep.subr.bf16.mxu1 %v2369_v26 }
 0x40c   :  { %995 = vmatprep.mubr.f32.mxu0 %v2266_v7  ;;  %1066 = vmatprep.mubr.f32.mxu1 %v2266_v7 }
 0x40e   :  { %1949 = vmatpush1.bf16.msra.mxu0 %v2341_v16  ;;  %1981 = vmatpush1.bf16.msra.mxu1 %v2381_v30 }
 0x40f   :  { %1951 = vmatprep.subr.bf16.mxu0 %v2357_v22  ;;  %1983 = vmatprep.subr.bf16.mxu1 %v2408_v39 }
 0x412   :  { %1953 = vmatpush1.bf16.msra.mxu0 %v2387_v32  ;;  %1985 = vmatpush1.bf16.msra.mxu1 %v2423_v44 }
 0x413   :  { %1955 = vmatprep.subr.bf16.mxu0 %v2400_v36  ;;  %1987 = vmatprep.subr.bf16.mxu1 %v2435_v48 }
 0x416   :  { %1957 = vmatpush1.bf16.msra.mxu0 %v2429_v46  ;;  %1989 = vmatpush1.bf16.msra.mxu1 %v2462_v57 }
 0x417   :  { %1959 = vmatprep.subr.bf16.mxu0 %v2444_v51  ;;  %1991 = vmatprep.subr.bf16.mxu1 %v2471_v60 }
 0x41a   :  { %1961 = vmatpush1.bf16.msra.mxu0 %v2465_v58  ;;  %1993 = vmatpush1.bf16.msra.mxu1 %v2498_v6 }
 0x41b   :  { %1963 = vmatprep.subr.bf16.mxu0 %v2480_v63  ;;  %1995 = vmatprep.subr.bf16.mxu1 %v2510_v13 }
 0x41e   :  { %1965 = vmatpush1.bf16.msra.mxu0 %v2504_v11  ;;  %1997 = vmatpush1.bf16.msra.mxu1 %v2534_v25 }
 0x41f   :  { %1967 = vmatprep.subr.bf16.mxu0 %v2519_v19  ;;  %1999 = vmatprep.subr.bf16.mxu1 %v2543_v29 }
 0x422   :  { %1969 = vmatpush1.bf16.msra.mxu0 %v2537_v27  ;;  %2001 = vmatpush1.bf16.msra.mxu1 %v2564_v40 }
 0x423   :  { %1971 = vmatprep.subr.bf16.mxu0 %v2552_v34  ;;  %2003 = vmatprep.subr.bf16.mxu1 %v2570_v42 }
 0x426   :  { %1973 = vmatpush1.bf16.msra.mxu0 %v2567_v41  ;;  %2005 = vmatpush1.bf16.msra.mxu1 %v2580_v47 }
 0x427   :  { %2007 = vmatprep.subr.bf16.mxu0 %v2304_v3  ;;  %2039 = vmatprep.subr.bf16.mxu1 %v2343_v17 }
 0x4dc   :  { %v828_v31 = vpop.f32.mrb[8].mxu0  ;;  %v899_v45 = vpop.f32.mrb[8].mxu1 }
 0x4dd   :  { %v904_v49 = vadd.f32 %v1553_v24, %v828_v31  ;;  %v830_v50 = vpop.f32.mrb[9].mxu0  ;;  %v901_v52 = vpop.f32.mrb[9].mxu1  ;;  %v906_v62 = vadd.f32 %v1555_v61, %v899_v45  ;;  %v1558_v24 = vld [vmem:[%s3013_s0 + $0xa8] sm:$0xff] }
 0x4de   :  { %v905_v53 = vadd.f32 %v1554_v28, %v830_v50  ;;  %v907_v59 = vadd.f32 %v1556_v54, %v901_v52 }
 0x4df   :  { %v908_v55 = vmul.f32 0.5, %v904_v49  ;;  %v910_v0 = vmul.f32 0.5, %v906_v62 }
 0x4e0   :  { %v909_v56 = vmul.f32 0.5, %v905_v53 }
 0x4e1   :  { %2202 = vtanh.f32 %v908_v55  ;;  %v1559_v55 = vld [vmem:[%s3013_s0 + $0xb0] sm:$0xff] }
 0x4e2   :  { %2204 = vtanh.f32 %v909_v56 }
 0x4e3   :  { %2206 = vtanh.f32 %v907_v59 }
 0x4e4   :  { %2208 = vtanh.f32 %v910_v0 }
 0x4eb   :  { %v2203_v1 = vpop.eup %2202 }
 0x4ec   :  { %v914_v2 = vadd.f32 1.0, %v2203_v1  ;;  %v2205_v4 = vpop.eup %2204 }
 0x4ed   :  { %v915_v10 = vadd.f32 1.0, %v2205_v4  ;;  %v2207_v12 = vpop.eup %2206 }
 0x4ee   :  { %v917_v5 = vmul.f32 0.5, %v914_v2  ;;  %v2209_v33 = vpop.eup %2208 }
 0x4ef   :  { %v918_v14 = vmul.f32 0.5, %v915_v10  ;;  %v916_v35 = vadd.f32 1.0, %v2209_v33 }
 0x4f0   :  { %v922_v15 = vmul.f32 %v2207_v12, %v917_v5 }
 0x4f1   :  { %v921_v20 = vmul.f32 %v918_v14, %v2785_v23  ;;  %v919_v37 = vmul.f32 0.5, %v916_v35  ;;  %v1557_v23 = vld [vmem:[%s3013_s0 + $0xa0] sm:$0xff] }
 0x4f3   :  { %v2835_v21 = vadd.f32 %v922_v15, %v921_v20 }
 0x4f5   :  { %2210 = vtanh.f32 %v2835_v21 }
 0x4ff   :  { %v2211_v38 = vpop.eup %2210 }
 0x500   :  { %v925_v43 = vmul.f32 %v2211_v38, %v919_v37  ;;  %v1434_v38 = vld [vmem:[%s3015_s2 + $0x8] sm:$0xff] }
 0x502   :  { %996 = vmatmul.mubr.f32.vlgmr.msra.gmra.mrb[10].mxu0 %v925_v43  ;;  %1067 = vmatmul.mubr.f32.vlgmr.msra.gmra.mrb[10].mxu1 %v925_v43 }
 0x503   :  { %2009 = vmatpush1.bf16.msra.mxu0 %v2317_v8  ;;  %2041 = vmatpush1.bf16.msra.mxu1 %v2345_v18 }
 0x504   :  { %2011 = vmatprep.subr.bf16.mxu0 %v2319_v9  ;;  %2043 = vmatprep.subr.bf16.mxu1 %v2369_v26 }
 0x505   :  { %1164 = vmatprep.mubr.f32.mxu0 %v2266_v7  ;;  %1235 = vmatprep.mubr.f32.mxu1 %v2266_v7 }
 0x507   :  { %2013 = vmatpush1.bf16.msra.mxu0 %v2341_v16  ;;  %2045 = vmatpush1.bf16.msra.mxu1 %v2381_v30 }
 0x508   :  { %2015 = vmatprep.subr.bf16.mxu0 %v2357_v22  ;;  %2047 = vmatprep.subr.bf16.mxu1 %v2408_v39 }
 0x50b   :  { %2017 = vmatpush1.bf16.msra.mxu0 %v2387_v32  ;;  %2049 = vmatpush1.bf16.msra.mxu1 %v2423_v44 }
 0x50c   :  { %2019 = vmatprep.subr.bf16.mxu0 %v2400_v36  ;;  %2051 = vmatprep.subr.bf16.mxu1 %v2435_v48 }
 0x50f   :  { %2021 = vmatpush1.bf16.msra.mxu0 %v2429_v46  ;;  %2053 = vmatpush1.bf16.msra.mxu1 %v2462_v57 }
 0x510   :  { %2023 = vmatprep.subr.bf16.mxu0 %v2444_v51  ;;  %2055 = vmatprep.subr.bf16.mxu1 %v2471_v60 }
 0x513   :  { %2025 = vmatpush1.bf16.msra.mxu0 %v2465_v58  ;;  %2057 = vmatpush1.bf16.msra.mxu1 %v2498_v6 }
 0x514   :  { %2027 = vmatprep.subr.bf16.mxu0 %v2480_v63  ;;  %2059 = vmatprep.subr.bf16.mxu1 %v2510_v13 }
 0x517   :  { %2029 = vmatpush1.bf16.msra.mxu0 %v2504_v11  ;;  %2061 = vmatpush1.bf16.msra.mxu1 %v2534_v25 }
 0x518   :  { %2031 = vmatprep.subr.bf16.mxu0 %v2519_v19  ;;  %2063 = vmatprep.subr.bf16.mxu1 %v2543_v29 }
 0x51b   :  { %2033 = vmatpush1.bf16.msra.mxu0 %v2537_v27  ;;  %2065 = vmatpush1.bf16.msra.mxu1 %v2564_v40 }
 0x51c   :  { %2035 = vmatprep.subr.bf16.mxu0 %v2552_v34  ;;  %2067 = vmatprep.subr.bf16.mxu1 %v2570_v42 }
 0x51f   :  { %2037 = vmatpush1.bf16.msra.mxu0 %v2567_v41  ;;  %2069 = vmatpush1.bf16.msra.mxu1 %v2580_v47 }
 0x520   :  { %2071 = vmatprep.subr.bf16.mxu0 %v2304_v3  ;;  %2103 = vmatprep.subr.bf16.mxu1 %v2343_v17  ;;  %v1560_v3 = vld [vmem:[%s3013_s0 + $0xb8] sm:$0xff] }
 0x5d5   :  { %v997_v28 = vpop.f32.mrb[10].mxu0  ;;  %v1068_v31 = vpop.f32.mrb[10].mxu1 }
 0x5d6   :  { %v1073_v45 = vadd.f32 %v1557_v23, %v997_v28  ;;  %v999_v49 = vpop.f32.mrb[11].mxu0  ;;  %v1070_v50 = vpop.f32.mrb[11].mxu1  ;;  %v1075_v56 = vadd.f32 %v1559_v55, %v1068_v31  ;;  %v2267_v23 = vmov 0.0|0.0   ;;  %v1436_v28 = vld [vmem:[%s3015_s2 + $0x18] sm:$0xff] }
 0x5d7   :  { %v1074_v52 = vadd.f32 %v1558_v24, %v999_v49  ;;  %v1076_v54 = vadd.f32 %v1560_v3, %v1070_v50  ;;  %v1435_v24 = vld [vmem:[%s3015_s2 + $0x10] sm:$0xff]  ;;  %v1438_v49 = vld [vmem:[%s3015_s2 + $0x28] sm:$0xff]  ;;  %v1440_v3 = vld [vmem:[%s3015_s2 + $0x38] sm:$0xff] }
 0x5d8   :  { %v1077_v53 = vmul.f32 0.5, %v1073_v45  ;;  %v1079_v59 = vmul.f32 0.5, %v1075_v56  ;;  %v2138_v31 = vpack.c.bf16 %v1436_v28, %v1435_v24  ;;  %v1437_v45 = vld [vmem:[%s3015_s2 + $0x20] sm:$0xff]  ;;  %v1443_v56 = vld [vmem:[%s3015_s2 + $0x50] sm:$0xff] }
 0x5d9   :  { %v1078_v17 = vmul.f32 0.5, %v1074_v52  ;;  %v2141_v50 = vpack.c.bf16 %v1438_v49, %v1437_v45  ;;  %v1439_v52 = vld [vmem:[%s3015_s2 + $0x30] sm:$0xff] }
 0x5da   :  { %2212 = vtanh.f32 %v1077_v53  ;;  %v2144_v53 = vpack.c.bf16 %v1440_v3, %v1439_v52 }
 0x5db   :  { %2214 = vtanh.f32 %v1078_v17  ;;  %v1441_v17 = vld [vmem:[%s3015_s2 + $0x40] sm:$0xff] }
 0x5dc   :  { %2216 = vtanh.f32 %v1076_v54  ;;  %v1442_v54 = vld [vmem:[%s3015_s2 + $0x48] sm:$0xff] }
 0x5dd   :  { %2218 = vtanh.f32 %v1079_v59  ;;  %v2147_v55 = vpack.c.bf16 %v1442_v54, %v1441_v17  ;;  %v1444_v59 = vld [vmem:[%s3015_s2 + $0x58] sm:$0xff] }
 0x5e4   :  { %v2213_v61 = vpop.eup %2212 }
 0x5e5   :  { %v1083_v62 = vadd.f32 1.0, %v2213_v61  ;;  %v2215_v0 = vpop.eup %2214  ;;  %v2150_v61 = vpack.c.bf16 %v1444_v59, %v1443_v56 }
 0x5e6   :  { %v1084_v2 = vadd.f32 1.0, %v2215_v0  ;;  %v2217_v4 = vpop.eup %2216  ;;  %v1446_v0 = vld [vmem:[%s3015_s2 + $0x68] sm:$0xff] }
 0x5e7   :  { %v1086_v1 = vmul.f32 0.5, %v1083_v62  ;;  %v2219_v15 = vpop.eup %2218  ;;  %v1445_v62 = vld [vmem:[%s3015_s2 + $0x60] sm:$0xff] }
 0x5e8   :  { %v1087_v5 = vmul.f32 0.5, %v1084_v2  ;;  %v1085_v20 = vadd.f32 1.0, %v2219_v15  ;;  %v1447_v2 = vld [vmem:[%s3015_s2 + $0x70] sm:$0xff] }
 0x5e9   :  { %v1091_v10 = vmul.f32 %v2217_v4, %v1086_v1  ;;  %v2153_v1 = vpack.c.bf16 %v1446_v0, %v1445_v62  ;;  %v1448_v4 = vld [vmem:[%s3015_s2 + $0x78] sm:$0xff] }
 0x5ea   :  { %v1090_v12 = vmul.f32 %v1087_v5, %v2835_v21  ;;  %v1088_v33 = vmul.f32 0.5, %v1085_v20  ;;  %v1433_v21 = vld [vmem:[%s3015_s2] sm:$0xff]  ;;  %v2156_v5 = vpack.c.bf16 %v1448_v4, %v1447_v2 }
 0x5eb   :  { %v2135_v43 = vpack.c.bf16 %v1434_v38, %v1433_v21 }
 0x5ec   :  { %v2885_v14 = vadd.f32 %v1091_v10, %v1090_v12  ;;  %v1565_v10 = vld [vmem:[%s3013_s0 + $0xe0] sm:$0xff] }
 0x5ee   :  { %2220 = vtanh.f32 %v2885_v14 }
 0x5f8   :  { %v2221_v35 = vpop.eup %2220 }
 0x5f9   :  { %v1094_v37 = vmul.f32 %v2221_v35, %v1088_v33 }
 0x5fb   :  { %1165 = vmatmul.mubr.f32.vlgmr.msra.gmra.mrb[12].mxu0 %v1094_v37  ;;  %1236 = vmatmul.mubr.f32.vlgmr.msra.gmra.mrb[12].mxu1 %v1094_v37  ;;  %v1568_v37 = vld [vmem:[%s3013_s0 + $0xf8] sm:$0xff] }
 0x5fc   :  { %2073 = vmatpush1.bf16.msra.mxu0 %v2317_v8  ;;  %2105 = vmatpush1.bf16.msra.mxu1 %v2345_v18  ;;  %v1561_v8 = vld [vmem:[%s3013_s0 + $0xc0] sm:$0xff] }
 0x5fd   :  { %2075 = vmatprep.subr.bf16.mxu0 %v2319_v9  ;;  %2107 = vmatprep.subr.bf16.mxu1 %v2369_v26  ;;  %v1562_v9 = vld [vmem:[%s3013_s0 + $0xc8] sm:$0xff] }
 0x5fe   :  { %1333 = vmatprep.mubr.f32.mxu0 %v2266_v7  ;;  %1404 = vmatprep.mubr.f32.mxu1 %v2266_v7 }
 0x600   :  { %2077 = vmatpush1.bf16.msra.mxu0 %v2341_v16  ;;  %2109 = vmatpush1.bf16.msra.mxu1 %v2381_v30 }
 0x601   :  { %2079 = vmatprep.subr.bf16.mxu0 %v2357_v22  ;;  %2111 = vmatprep.subr.bf16.mxu1 %v2408_v39 }
 0x604   :  { %2081 = vmatpush1.bf16.msra.mxu0 %v2387_v32  ;;  %2113 = vmatpush1.bf16.msra.mxu1 %v2423_v44 }
 0x605   :  { %2083 = vmatprep.subr.bf16.mxu0 %v2400_v36  ;;  %2115 = vmatprep.subr.bf16.mxu1 %v2435_v48  ;;  %v1564_v36 = vld [vmem:[%s3013_s0 + $0xd8] sm:$0xff]  ;;  %v1563_v48 = vld [vmem:[%s3013_s0 + $0xd0] sm:$0xff] }
 0x608   :  { %2085 = vmatpush1.bf16.msra.mxu0 %v2429_v46  ;;  %2117 = vmatpush1.bf16.msra.mxu1 %v2462_v57 }
 0x609   :  { %2087 = vmatprep.subr.bf16.mxu0 %v2444_v51  ;;  %2119 = vmatprep.subr.bf16.mxu1 %v2471_v60 }
 0x60c   :  { %2089 = vmatpush1.bf16.msra.mxu0 %v2465_v58  ;;  %2121 = vmatpush1.bf16.msra.mxu1 %v2498_v6 }
 0x60d   :  { %2091 = vmatprep.subr.bf16.mxu0 %v2480_v63  ;;  %2123 = vmatprep.subr.bf16.mxu1 %v2510_v13 }
 0x610   :  { %2093 = vmatpush1.bf16.msra.mxu0 %v2504_v11  ;;  %2125 = vmatpush1.bf16.msra.mxu1 %v2534_v25 }
 0x611   :  { %2095 = vmatprep.subr.bf16.mxu0 %v2519_v19  ;;  %2127 = vmatprep.subr.bf16.mxu1 %v2543_v29 }
 0x614   :  { %2097 = vmatpush1.bf16.msra.mxu0 %v2537_v27  ;;  %2129 = vmatpush1.bf16.msra.mxu1 %v2564_v40 }
 0x615   :  { %2099 = vmatprep.subr.bf16.mxu0 %v2552_v34  ;;  %2131 = vmatprep.subr.bf16.mxu1 %v2570_v42 }
 0x618   :  { %2101 = vmatpush1.bf16.msra.mxu0 %v2567_v41  ;;  %2133 = vmatpush1.bf16.msra.mxu1 %v2580_v47 }
 0x619   :  { %2134 = vmatprep.subr.bf16.mxu0 %v2267_v23 }
 0x6ce   :  { %v1166_v16 = vpop.f32.mrb[12].mxu0  ;;  %v1237_v18 = vpop.f32.mrb[12].mxu1 }
 0x6cf   :  { %v1242_v22 = vadd.f32 %v1561_v8, %v1166_v16  ;;  %v1168_v26 = vpop.f32.mrb[13].mxu0  ;;  %v1239_v30 = vpop.f32.mrb[13].mxu1  ;;  %v1244_v51 = vadd.f32 %v1563_v48, %v1237_v18  ;;  %v1567_v18 = vld [vmem:[%s3013_s0 + $0xf0] sm:$0xff] }
 0x6d0   :  { %v1243_v32 = vadd.f32 %v1562_v9, %v1168_v26  ;;  %v1245_v46 = vadd.f32 %v1564_v36, %v1239_v30 }
 0x6d1   :  { %v1246_v39 = vmul.f32 0.5, %v1242_v22  ;;  %v1248_v57 = vmul.f32 0.5, %v1244_v51 }
 0x6d2   :  { %v1247_v44 = vmul.f32 0.5, %v1243_v32 }
 0x6d3   :  { %2222 = vtanh.f32 %v1246_v39 }
 0x6d4   :  { %2224 = vtanh.f32 %v1247_v44 }
 0x6d5   :  { %2226 = vtanh.f32 %v1245_v46 }
 0x6d6   :  { %2228 = vtanh.f32 %v1248_v57 }
 0x6dd   :  { %v2223_v58 = vpop.eup %2222 }
 0x6de   :  { %v1252_v60 = vadd.f32 1.0, %v2223_v58  ;;  %v2225_v63 = vpop.eup %2224 }
 0x6df   :  { %v1253_v11 = vadd.f32 1.0, %v2225_v63  ;;  %v2227_v13 = vpop.eup %2226 }
 0x6e0   :  { %v1255_v6 = vmul.f32 0.5, %v1252_v60  ;;  %v2229_v34 = vpop.eup %2228 }
 0x6e1   :  { %v1256_v19 = vmul.f32 0.5, %v1253_v11  ;;  %v1254_v40 = vadd.f32 1.0, %v2229_v34 }
 0x6e2   :  { %v1260_v25 = vmul.f32 %v2227_v13, %v1255_v6 }
 0x6e3   :  { %v1259_v27 = vmul.f32 %v1256_v19, %v2885_v14  ;;  %v1257_v41 = vmul.f32 0.5, %v1254_v40  ;;  %v1569_v19 = vld [vmem:[%s3016_s3] ss:$0 sm:$0xff] }
 0x6e5   :  { %v2933_v29 = vadd.f32 %v1260_v25, %v1259_v27 }
 0x6e7   :  { %2230 = vtanh.f32 %v2933_v29 }
 0x6f1   :  { %v2231_v42 = vpop.eup %2230 }
 0x6f2   :  { %v1263_v47 = vmul.f32 %v2231_v42, %v1257_v41 }
 0x6f4   :  { %1334 = vmatmul.mubr.f32.vlgmr.msra.gmra.mrb[14].mxu0 %v1263_v47  ;;  %1405 = vmatmul.mubr.f32.vlgmr.msra.gmra.mrb[14].mxu1 %v1263_v47 }
 0x6f5   :  { %2136 = vmatpush3.bf16.msra.mxu0 %v2135_v43  ;;  %1619 = vmatprep.mubr.msk.f32.mxu0 %vm2268_vm0, %v2266_v7  ;;  %v1566_v7 = vld [vmem:[%s3013_s0 + $0xe8] sm:$0xff] }
 0x6f6   :  { %2137 = vmatprep.subr.bf16.mxu0 %v2267_v23 }
 0x6f9   :  { %2139 = vmatpush3.bf16.msra.mxu0 %v2138_v31 }
 0x6fa   :  { %2140 = vmatprep.subr.bf16.mxu0 %v2267_v23 }
 0x6fd   :  { %2142 = vmatpush3.bf16.msra.mxu0 %v2141_v50 }
 0x6fe   :  { %2143 = vmatprep.subr.bf16.mxu0 %v2267_v23 }
 0x701   :  { %2145 = vmatpush3.bf16.msra.mxu0 %v2144_v53 }
 0x702   :  { %2146 = vmatprep.subr.bf16.mxu0 %v2267_v23 }
 0x705   :  { %2148 = vmatpush3.bf16.msra.mxu0 %v2147_v55 }
 0x706   :  { %2149 = vmatprep.subr.bf16.mxu0 %v2267_v23 }
 0x709   :  { %2151 = vmatpush3.bf16.msra.mxu0 %v2150_v61 }
 0x70a   :  { %2152 = vmatprep.subr.bf16.mxu0 %v2267_v23 }
 0x70d   :  { %2154 = vmatpush3.bf16.msra.mxu0 %v2153_v1 }
 0x70e   :  { %2155 = vmatprep.subr.bf16.mxu0 %v2267_v23 }
 0x711   :  { %2157 = vmatpush3.bf16.msra.mxu0 %v2156_v5 }
 0x7c7   :  { %v1335_v12 = vpop.f32.mrb[14].mxu0  ;;  %v1406_v14 = vpop.f32.mrb[14].mxu1 }
 0x7c8   :  { %v1411_v15 = vadd.f32 %v1565_v10, %v1335_v12  ;;  %v1337_v20 = vpop.f32.mrb[15].mxu0  ;;  %v1408_v33 = vpop.f32.mrb[15].mxu1  ;;  %v1413_v22 = vadd.f32 %v1567_v18, %v1406_v14 }
 0x7c9   :  { %v1412_v35 = vadd.f32 %v1566_v7, %v1337_v20  ;;  %v1414_v16 = vadd.f32 %v1568_v37, %v1408_v33 }
 0x7ca   :  { %v1415_v8 = vmul.f32 0.5, %v1411_v15  ;;  %v1417_v26 = vmul.f32 0.5, %v1413_v22 }
 0x7cb   :  { %v1416_v9 = vmul.f32 0.5, %v1412_v35 }
 0x7cc   :  { %2232 = vtanh.f32 %v1415_v8 }
 0x7cd   :  { %2234 = vtanh.f32 %v1416_v9 }
 0x7ce   :  { %2236 = vtanh.f32 %v1414_v16 }
 0x7cf   :  { %2238 = vtanh.f32 %v1417_v26 }
 0x7d6   :  { %v2233_v30 = vpop.eup %2232 }
 0x7d7   :  { %v1421_v32 = vadd.f32 1.0, %v2233_v30  ;;  %v2235_v36 = vpop.eup %2234 }
 0x7d8   :  { %v1422_v44 = vadd.f32 1.0, %v2235_v36  ;;  %v2237_v46 = vpop.eup %2236 }
 0x7d9   :  { %v1424_v39 = vmul.f32 0.5, %v1421_v32  ;;  %v2239_v60 = vpop.eup %2238 }
 0x7da   :  { %v1425_v48 = vmul.f32 0.5, %v1422_v44  ;;  %v1423_v63 = vadd.f32 1.0, %v2239_v60 }
 0x7db   :  { %v1429_v51 = vmul.f32 %v2237_v46, %v1424_v39 }
 0x7dc   :  { %v1428_v57 = vmul.f32 %v1425_v48, %v2933_v29  ;;  %v1426_v6 = vmul.f32 0.5, %v1423_v63 }
 0x7de   :  { %v1430_v58 = vadd.f32 %v1429_v51, %v1428_v57 }
 0x7e0   :  { %2240 = vtanh.f32 %v1430_v58 }
 0x7ea   :  { %v2241_v11 = vpop.eup %2240 }
 0x7eb   :  { %v1432_v13 = vmul.f32 %v2241_v11, %v1426_v6 }
 0x7ed   :  { %1620 = vmatmul.mubr.f32.vlgmr.msra.gmra.mrb[16].mxu0 %v1432_v13 }
 0x8c0   :  { %v1522_v25 = vpop.f32.mrb[16].mxu0 }
 0x8c1   :  { %v1523_v27 = vadd.f32 %v1569_v19, %v1522_v25  ;;  %v1621_v34 = vpop.f32.mrb[17].mxu0 }
 0x8c3   :  { %1526 = vst [vmem:[#allocation2] sm:$0xff] %v1523_v27 }
 0x8c4   :  { %2253 = shalt.err (!%p2250_p4)
}
 0x8c5   :  { %s2254_s6 = scalar_lea.hbm %s3017_s4, 128 }
 0x8c6   :  { %p2255_p5 = scmp.ne.s32.totalorder %s3017_s4, %s2254_s6  ;;  %p2258_p6 = scmp.lt.u32.totalorder %s2254_s6, %s3017_s4 }
 0x8c8   :  { %p2260_p7 = pnand %p2258_p6, %p2255_p5 }
 0x8ca   :  { %2263 = shalt.err (!%p2260_p7)
}
 0x8cb   :  { %1536 = dma.vmem_to_hbm [thread:$0]  %s1534_s28, 128, %s3017_s4, [#allocation3]  }
 0x8cc   :  { %2264 = dma.done.wait [#allocation3], 128  }
 0x8cd   :  { %2265 = vsyncadd [#allocation3], 4294967168 }
 0x8ce   :  { %1540 = vsyncpa [#allocation3], 1 }

</bundles_post_ra>
